<compile_context>
chip_gen: v7x
topology: tpu7x:2x2x1
jax: 0.10.0
libtpu: 0.0.40
codegen_flags: <defaults>
</compile_context>

<pallas_src>
import jax
import jax.numpy as jnp
from jax.experimental import pallas as pl
from jax.experimental.pallas import tpu as pltpu

# ----------------------------- model dims -----------------------------------
B = 2          # batch (graphs / proteins)
N = 8          # nodes (residues) per graph
D = 32         # feature dim ("dim" of the module)
EH = 32        # edge-MLP hidden width
M = 32         # edge message dim
NH = 64        # node-MLP hidden width
OUT = 1357     # cleavage-site logits (nn.Linear(dim, 1357))
OUT_PAD = 1408 # 11 * 128 -> lane-dense final matmul / store

# -------------------- packed small-parameter slab layout ---------------------
# One f32 (SMALL_ROWS, SMALL_COLS) slab holds every small weight/bias; static
# row offsets are used to slice it inside the kernel (single DMA for all).
SMALL_COLS = 64
R_WE1 = 0              # edge MLP layer 1 fused [h_i|h_j] weight: (D, 2*EH)
R_WE2 = 32             # edge MLP layer 2 weight:                 (EH, M)
R_WN1 = 64             # node MLP layer 1 fused [h|m] weight:     (D+M, NH)
R_WN2 = 128            # node MLP layer 2 weight:                 (NH, D)
R_WD1 = 192            # distance row of edge layer 1:            (1, EH)
R_BE1 = 193            # edge layer 1 bias:                       (1, EH)
R_BE2 = 194            # edge layer 2 bias:                       (1, M)
R_BN1 = 195            # node layer 1 bias:                       (1, NH)
R_BN2 = 196            # node layer 2 bias:                       (1, D)
SMALL_ROWS = 200       # padded to a sublane multiple

# Big bf16 slab: rows 0:D = padded w_lin, row D = padded b_lin, rest zero.
BIG_ROWS = 40


def _silu(x):
    return x * jax.nn.sigmoid(x)


def egnn_cleavage_kernel(feats_ref, coors_ref, mask_ref, small_ref, wl_hbm_ref,
                         out_ref, wl_vmem, wl_sem):
    # Kick off the big (bf16) output-projection weight DMA immediately; wait
    # for it only right before the final matmul so it overlaps the EGNN work.
    wl_copy = pltpu.make_async_copy(wl_hbm_ref, wl_vmem, wl_sem)
    wl_copy.start()

    h3 = feats_ref[...]                                   # (B, N, D)
    x3 = coors_ref[...]                                   # (B, N, 3)
    mask = mask_ref[...]                                  # (B, N, 1)

    # ---- static slices into the packed small-parameter slab -----------------
    we1 = small_ref[R_WE1:R_WE1 + D, :]                   # (D, 2*EH)
    we2 = small_ref[R_WE2:R_WE2 + EH, 0:M]                # (EH, M)
    wn1 = small_ref[R_WN1:R_WN1 + D + M, :]               # (D+M, NH)
    wn2 = small_ref[R_WN2:R_WN2 + NH, 0:D]                # (NH, D)
    wd1 = small_ref[R_WD1:R_WD1 + 1, 0:EH]                # (1, EH)
    be1 = small_ref[R_BE1:R_BE1 + 1, 0:EH]                # (1, EH)
    be2 = small_ref[R_BE2:R_BE2 + 1, 0:M]                 # (1, M)
    bn1 = small_ref[R_BN1:R_BN1 + 1, 0:NH]                # (1, NH)
    bn2 = small_ref[R_BN2:R_BN2 + 1, 0:D]                 # (1, D)

    # ---- pairwise squared distances (coordinate-unrolled: no (B,N,N,3) tensor,
    #      no cross-lane reduce over the size-3 axis) ---------------------------
    d2 = None
    for c in range(3):
        xc = x3[:, :, c:c + 1]                            # (B, N, 1)
        diff = xc[:, :, None, :] - xc[:, None, :, :]      # (B, N, N, 1)
        sq = diff * diff
        d2 = sq if d2 is None else d2 + sq                # (B, N, N, 1)

    # ---- edge MLP, layer 1: phi_e1([h_i, h_j, ||x_i - x_j||^2]) -------------
    h_flat = h3.reshape(B * N, D)                         # (16, D)
    ab = jnp.dot(h_flat, we1,
                 preferred_element_type=jnp.float32)      # (16, 2*EH)
    ai = ab[:, :EH].reshape(B, N, EH)
    aj = ab[:, EH:].reshape(B, N, EH)
    e1 = (ai[:, :, None, :] + aj[:, None, :, :]
          + d2 * wd1[None, None, :, :]
          + be1[None, None, :, :])                        # (B, N, N, EH)
    e1 = _silu(e1)

    # ---- edge MLP, layer 2 -> messages m_ij ----------------------------------
    m_ij = jnp.dot(e1.reshape(B * N * N, EH), we2,
                   preferred_element_type=jnp.float32) + be2
    m_ij = _silu(m_ij).reshape(B, N, N, M)

    # ---- masked aggregation over neighbours j --------------------------------
    m_agg = jnp.sum(m_ij * mask[:, None, :, :], axis=2)   # (B, N, M)
    m_flat = m_agg.reshape(B * N, M)

    # ---- node MLP with residual ([h, m] @ Wn1 decomposed, no concat) ---------
    n1 = (jnp.dot(h_flat, wn1[:D, :], preferred_element_type=jnp.float32)
          + jnp.dot(m_flat, wn1[D:, :], preferred_element_type=jnp.float32)
          + bn1)
    n1 = _silu(n1)
    n2 = jnp.dot(n1, wn2, preferred_element_type=jnp.float32) + bn2
    h_out = (h_flat + n2).reshape(B, N, D)                # (B, N, D)

    # ---- masked mean pooling over nodes (exact divide; correctness fix) ------
    denom = jnp.maximum(jnp.sum(mask, axis=1), 1e-9)      # (B, 1)
    pooled = jnp.sum(h_out * mask, axis=1) / denom        # (B, D)

    # ---- final linear: dim -> OUT_PAD (bf16 weight, f32 accumulation) --------
    wl_copy.wait()
    wl = wl_vmem[0:D, :]                                  # (D, OUT_PAD) bf16
    bl = wl_vmem[D:D + 1, :].astype(jnp.float32)          # (1, OUT_PAD)
    out_ref[...] = (jnp.dot(pooled.astype(jnp.bfloat16), wl,
                            preferred_element_type=jnp.float32) + bl)


def prepare_params(params):
    """One-time host-side packing of all parameters into two slabs.

    Call once and reuse: the jitted forward does no per-call padding/packing.
    """
    small = jnp.zeros((SMALL_ROWS, SMALL_COLS), jnp.float32)
    small = small.at[R_WE1:R_WE1 + D, :].set(params["we1"])
    small = small.at[R_WE2:R_WE2 + EH, 0:M].set(params["we2"])
    small = small.at[R_WN1:R_WN1 + D + M, :].set(params["wn1"])
    small = small.at[R_WN2:R_WN2 + NH, 0:D].set(params["wn2"])
    small = small.at[R_WD1, 0:EH].set(params["wd1"][0])
    small = small.at[R_BE1, 0:EH].set(params["be1"][0])
    small = small.at[R_BE2, 0:M].set(params["be2"][0])
    small = small.at[R_BN1, 0:NH].set(params["bn1"][0])
    small = small.at[R_BN2, 0:D].set(params["bn2"][0])

    big = jnp.zeros((BIG_ROWS, OUT_PAD), jnp.float32)
    big = big.at[0:D, 0:OUT].set(params["w_lin"])          # zero-padded columns
    big = big.at[D, 0:OUT].set(params["b_lin"][0])
    return {"small": small, "big": big.astype(jnp.bfloat16)}


@jax.jit
def egnn_cleavage_forward(feats, coors, mask_col, packed):
    """feats (B,N,D) f32, coors (B,N,3) f32, mask_col (B,N,1) f32,
    packed = prepare_params(params).  Returns (B, OUT) logits."""
    flops = 2 * (B * N * D * (2 * EH)        # edge layer 1 (h part)
                 + B * N * N * EH * M        # edge layer 2
                 + B * N * (D + M) * NH      # node layer 1
                 + B * N * NH * D            # node layer 2
                 + B * D * OUT_PAD)          # final linear
    transcendentals = B * N * N * (EH + M) + B * N * NH
    bytes_accessed = (4 * (B * N * D + B * N * 3 + B * N
                           + SMALL_ROWS * SMALL_COLS + B * OUT_PAD)
                      + 2 * BIG_ROWS * OUT_PAD)

    out = pl.pallas_call(
        egnn_cleavage_kernel,
        out_shape=jax.ShapeDtypeStruct((B, OUT_PAD), jnp.float32),
        in_specs=[
            pl.BlockSpec(memory_space=pltpu.MemorySpace.VMEM),   # feats
            pl.BlockSpec(memory_space=pltpu.MemorySpace.VMEM),   # coors
            pl.BlockSpec(memory_space=pltpu.MemorySpace.VMEM),   # mask
            pl.BlockSpec(memory_space=pltpu.MemorySpace.VMEM),   # small param slab
            pl.BlockSpec(memory_space=pl.ANY),                   # big bf16 weight (HBM)
        ],
        out_specs=pl.BlockSpec(memory_space=pltpu.MemorySpace.VMEM),
        scratch_shapes=[
            pltpu.VMEM((BIG_ROWS, OUT_PAD), jnp.bfloat16),       # landing buffer
            pltpu.SemaphoreType.DMA,                             # its DMA semaphore
        ],
        cost_estimate=pl.CostEstimate(flops=flops,
                                      transcendentals=transcendentals,
                                      bytes_accessed=bytes_accessed),
    )(feats, coors, mask_col, packed["small"], packed["big"])
    return out[:, :OUT]


def _reference_forward(feats, coors, mask, params):
    """Pure-JAX f32 reference of the same synthetic EGNN + pooling + linear."""
    h = feats.astype(jnp.float32)
    x = coors.astype(jnp.float32)
    m = mask.astype(jnp.float32)
    rel = x[:, :, None, :] - x[:, None, :, :]
    d2 = jnp.sum(rel * rel, axis=-1, keepdims=True)
    ab = h @ params["we1"]
    ai, aj = ab[..., :EH], ab[..., EH:]
    e1 = (ai[:, :, None, :] + aj[:, None, :, :]
          + d2 * params["wd1"][None, None, :, :]
          + params["be1"][None, None, :, :])
    e1 = jax.nn.silu(e1)
    m_ij = jax.nn.silu(e1 @ params["we2"] + params["be2"])
    m_agg = jnp.sum(m_ij * m[:, None, :, None], axis=2)
    hm = jnp.concatenate([h, m_agg], axis=-1)
    n1 = jax.nn.silu(hm @ params["wn1"] + params["bn1"])
    h_out = h + (n1 @ params["wn2"] + params["bn2"])
    denom = jnp.maximum(jnp.sum(m, axis=-1, keepdims=True), 1e-9)
    pooled = jnp.sum(h_out * m[:, :, None], axis=1) / denom
    return pooled @ params["w_lin"] + params["b_lin"]


def init_params(key):
    ks = jax.random.split(key, 7)
    s = 0.1
    return {
        # edge MLP layer 1: weight for [h_i | h_j] fused, plus distance row + bias
        "we1": s * jax.random.normal(ks[0], (D, 2 * EH), jnp.float32),
        "wd1": s * jax.random.normal(ks[1], (1, EH), jnp.float32),
        "be1": jnp.zeros((1, EH), jnp.float32),
        # edge MLP layer 2
        "we2": s * jax.random.normal(ks[2], (EH, M), jnp.float32),
        "be2": jnp.zeros((1, M), jnp.float32),
        # node MLP ([h, m] -> NH -> D), residual added in kernel
        "wn1": s * jax.random.normal(ks[3], (D + M, NH), jnp.float32),
        "bn1": jnp.zeros((1, NH), jnp.float32),
        "wn2": s * jax.random.normal(ks[4], (NH, D), jnp.float32),
        "bn2": jnp.zeros((1, D), jnp.float32),
        # nn.Linear(dim, 1357), stored transposed: [D, OUT]
        "w_lin": s * jax.random.normal(ks[5], (D, OUT), jnp.float32),
        "b_lin": s * jax.random.normal(ks[6], (1, OUT), jnp.float32),
    }


if __name__ == "__main__":
    key = jax.random.PRNGKey(0)
    k_feats, k_coors, k_params = jax.random.split(key, 3)
    params = init_params(k_params)
    packed = prepare_params(params)            # one-time packing (hoisted out of forward)

    # Deterministic example inputs: feats (B,N,D), coors (B,N,3), mask (B,N).
    feats = 0.1 * jax.random.normal(k_feats, (B, N, D), jnp.float32)
    coors = jax.random.normal(k_coors, (B, N, 3), jnp.float32)
    lengths = jnp.array([N, 5], dtype=jnp.int32)           # second graph is padded
    mask = (jnp.arange(N)[None, :] < lengths[:, None]).astype(jnp.float32)
    mask_col = mask.reshape(B, N, 1)           # one-time shaping (hoisted out of forward)

    logits = egnn_cleavage_forward(feats, coors, mask_col, packed)
    jax.block_until_ready(logits)

    assert logits.shape == (B, OUT), logits.shape
    assert bool(jnp.all(jnp.isfinite(logits)))

    ref = _reference_forward(feats, coors, mask, params)
    assert bool(jnp.allclose(logits, ref, rtol=1e-2, atol=1e-2)), (
        float(jnp.max(jnp.abs(logits - ref))))

    print("KERNEL_OK")
</pallas_src>

<mosaic_0001>
module attributes {stable_mosaic.version = 11 : i64} {
  func.func @egnn_cleavage_kernel(%arg0: memref<2x8x32xf32, #tpu.memory_space<vmem>>, %arg1: memref<2x8x3xf32, #tpu.memory_space<vmem>>, %arg2: memref<2x8x1xf32, #tpu.memory_space<vmem>>, %arg3: memref<200x64xf32, #tpu.memory_space<vmem>>, %arg4: memref<40x1408xbf16, #tpu.memory_space<any>>, %arg5: memref<2x1408xf32, #tpu.memory_space<vmem>>, %arg6: memref<40x1408xbf16, #tpu.memory_space<vmem>>, %arg7: memref<!tpu.dma_semaphore, #tpu.memory_space<semaphore_mem>>) attributes {dimension_semantics = [], scalar_prefetch = 0 : i64, scratch_operands = 2 : i64, tpu.core_type = #tpu.core_type<tc>} {
    tpu.enqueue_dma source(%arg4 : memref<40x1408xbf16, #tpu.memory_space<any>>) target(%arg6 : memref<40x1408xbf16, #tpu.memory_space<vmem>>) target_semaphore(%arg7 : memref<!tpu.dma_semaphore, #tpu.memory_space<semaphore_mem>>)
    %c0 = arith.constant 0 : index
    %c0_0 = arith.constant 0 : index
    %c0_1 = arith.constant 0 : index
    %0 = vector.load %arg0[%c0, %c0_0, %c0_1] : memref<2x8x32xf32, #tpu.memory_space<vmem>>, vector<2x8x32xf32>
    %c0_2 = arith.constant 0 : index
    %c0_3 = arith.constant 0 : index
    %c0_4 = arith.constant 0 : index
    %1 = vector.load %arg1[%c0_2, %c0_3, %c0_4] : memref<2x8x3xf32, #tpu.memory_space<vmem>>, vector<2x8x3xf32>
    %c0_5 = arith.constant 0 : index
    %c0_6 = arith.constant 0 : index
    %c0_7 = arith.constant 0 : index
    %2 = vector.load %arg2[%c0_5, %c0_6, %c0_7] : memref<2x8x1xf32, #tpu.memory_space<vmem>>, vector<2x8x1xf32>
    %c0_8 = arith.constant 0 : index
    %c0_9 = arith.constant 0 : index
    %3 = vector.load %arg3[%c0_8, %c0_9] : memref<200x64xf32, #tpu.memory_space<vmem>>, vector<32x64xf32>
    %c32 = arith.constant 32 : index
    %c0_10 = arith.constant 0 : index
    %4 = vector.load %arg3[%c32, %c0_10] : memref<200x64xf32, #tpu.memory_space<vmem>>, vector<32x32xf32>
    %c64 = arith.constant 64 : index
    %c0_11 = arith.constant 0 : index
    %5 = vector.load %arg3[%c64, %c0_11] : memref<200x64xf32, #tpu.memory_space<vmem>>, vector<64x64xf32>
    %c128 = arith.constant 128 : index
    %c0_12 = arith.constant 0 : index
    %6 = vector.load %arg3[%c128, %c0_12] : memref<200x64xf32, #tpu.memory_space<vmem>>, vector<64x32xf32>
    %c192 = arith.constant 192 : index
    %c0_13 = arith.constant 0 : index
    %7 = vector.load %arg3[%c192, %c0_13] : memref<200x64xf32, #tpu.memory_space<vmem>>, vector<1x32xf32>
    %c193 = arith.constant 193 : index
    %c0_14 = arith.constant 0 : index
    %8 = vector.load %arg3[%c193, %c0_14] : memref<200x64xf32, #tpu.memory_space<vmem>>, vector<1x32xf32>
    %c194 = arith.constant 194 : index
    %c0_15 = arith.constant 0 : index
    %9 = vector.load %arg3[%c194, %c0_15] : memref<200x64xf32, #tpu.memory_space<vmem>>, vector<1x32xf32>
    %c195 = arith.constant 195 : index
    %c0_16 = arith.constant 0 : index
    %10 = vector.load %arg3[%c195, %c0_16] : memref<200x64xf32, #tpu.memory_space<vmem>>, vector<1x64xf32>
    %c196 = arith.constant 196 : index
    %c0_17 = arith.constant 0 : index
    %11 = vector.load %arg3[%c196, %c0_17] : memref<200x64xf32, #tpu.memory_space<vmem>>, vector<1x32xf32>
    %12 = vector.extract_strided_slice %1 {offsets = [0, 0, 0], sizes = [2, 8, 1], strides = [1, 1, 1]} : vector<2x8x3xf32> to vector<2x8x1xf32>
    %13 = vector.shape_cast %12 : vector<2x8x1xf32> to vector<2x8x1x1xf32>
    %14 = vector.shape_cast %12 : vector<2x8x1xf32> to vector<2x1x8x1xf32>
    %15 = vector.broadcast %13 : vector<2x8x1x1xf32> to vector<2x8x8x1xf32>
    %16 = vector.broadcast %14 : vector<2x1x8x1xf32> to vector<2x8x8x1xf32>
    %17 = arith.subf %15, %16 : vector<2x8x8x1xf32>
    %18 = arith.mulf %17, %17 : vector<2x8x8x1xf32>
    %19 = vector.extract_strided_slice %1 {offsets = [0, 0, 1], sizes = [2, 8, 1], strides = [1, 1, 1]} : vector<2x8x3xf32> to vector<2x8x1xf32>
    %20 = vector.shape_cast %19 : vector<2x8x1xf32> to vector<2x8x1x1xf32>
    %21 = vector.shape_cast %19 : vector<2x8x1xf32> to vector<2x1x8x1xf32>
    %22 = vector.broadcast %20 : vector<2x8x1x1xf32> to vector<2x8x8x1xf32>
    %23 = vector.broadcast %21 : vector<2x1x8x1xf32> to vector<2x8x8x1xf32>
    %24 = arith.subf %22, %23 : vector<2x8x8x1xf32>
    %25 = arith.mulf %24, %24 : vector<2x8x8x1xf32>
    %26 = arith.addf %18, %25 : vector<2x8x8x1xf32>
    %27 = vector.extract_strided_slice %1 {offsets = [0, 0, 2], sizes = [2, 8, 1], strides = [1, 1, 1]} : vector<2x8x3xf32> to vector<2x8x1xf32>
    %28 = vector.shape_cast %27 : vector<2x8x1xf32> to vector<2x8x1x1xf32>
    %29 = vector.shape_cast %27 : vector<2x8x1xf32> to vector<2x1x8x1xf32>
    %30 = vector.broadcast %28 : vector<2x8x1x1xf32> to vector<2x8x8x1xf32>
    %31 = vector.broadcast %29 : vector<2x1x8x1xf32> to vector<2x8x8x1xf32>
    %32 = arith.subf %30, %31 : vector<2x8x8x1xf32>
    %33 = arith.mulf %32, %32 : vector<2x8x8x1xf32>
    %34 = arith.addf %26, %33 : vector<2x8x8x1xf32>
    %35 = vector.shape_cast %0 : vector<2x8x32xf32> to vector<16x32xf32>
    %cst = arith.constant dense<0.000000e+00> : vector<16x64xf32>
    %36 = tpu.matmul %35, %3, %cst {dimension_numbers = #tpu.dot_dimension_numbers<[1], [0], [0], [1], [0, 0, 1, 1], [], []>} : vector<16x32xf32>, vector<32x64xf32>, vector<16x64xf32> -> vector<16x64xf32>
    %37 = vector.extract_strided_slice %36 {offsets = [0, 0], sizes = [16, 32], strides = [1, 1]} : vector<16x64xf32> to vector<16x32xf32>
    %38 = vector.shape_cast %37 : vector<16x32xf32> to vector<2x8x32xf32>
    %39 = vector.extract_strided_slice %36 {offsets = [0, 32], sizes = [16, 32], strides = [1, 1]} : vector<16x64xf32> to vector<16x32xf32>
    %40 = vector.shape_cast %39 : vector<16x32xf32> to vector<2x8x32xf32>
    %41 = vector.shape_cast %38 : vector<2x8x32xf32> to vector<2x8x1x32xf32>
    %42 = vector.shape_cast %40 : vector<2x8x32xf32> to vector<2x1x8x32xf32>
    %43 = vector.broadcast %41 : vector<2x8x1x32xf32> to vector<2x8x8x32xf32>
    %44 = vector.broadcast %42 : vector<2x1x8x32xf32> to vector<2x8x8x32xf32>
    %45 = arith.addf %43, %44 : vector<2x8x8x32xf32>
    %46 = vector.shape_cast %7 : vector<1x32xf32> to vector<1x1x1x32xf32>
    %47 = vector.broadcast %34 : vector<2x8x8x1xf32> to vector<2x8x8x32xf32>
    %48 = vector.broadcast %46 : vector<1x1x1x32xf32> to vector<2x8x8x32xf32>
    %49 = arith.mulf %47, %48 : vector<2x8x8x32xf32>
    %50 = arith.addf %45, %49 : vector<2x8x8x32xf32>
    %51 = vector.shape_cast %8 : vector<1x32xf32> to vector<1x1x1x32xf32>
    %52 = vector.broadcast %51 : vector<1x1x1x32xf32> to vector<2x8x8x32xf32>
    %53 = arith.addf %50, %52 : vector<2x8x8x32xf32>
    %54 = arith.negf %53 : vector<2x8x8x32xf32>
    %55 = math.exp %54 : vector<2x8x8x32xf32>
    %cst_18 = arith.constant 1.000000e+00 : f32
    %56 = vector.broadcast %cst_18 : f32 to vector<2x8x8x32xf32>
    %57 = arith.addf %56, %55 : vector<2x8x8x32xf32>
    %58 = arith.divf %56, %57 : vector<2x8x8x32xf32>
    %59 = arith.mulf %53, %58 : vector<2x8x8x32xf32>
    %60 = vector.shape_cast %59 : vector<2x8x8x32xf32> to vector<128x32xf32>
    %cst_19 = arith.constant dense<0.000000e+00> : vector<128x32xf32>
    %61 = tpu.matmul %60, %4, %cst_19 {dimension_numbers = #tpu.dot_dimension_numbers<[1], [0], [0], [1], [0, 0, 1, 1], [], []>} : vector<128x32xf32>, vector<32x32xf32>, vector<128x32xf32> -> vector<128x32xf32>
    %62 = vector.broadcast %9 : vector<1x32xf32> to vector<128x32xf32>
    %63 = arith.addf %61, %62 : vector<128x32xf32>
    %64 = arith.negf %63 : vector<128x32xf32>
    %65 = math.exp %64 : vector<128x32xf32>
    %cst_20 = arith.constant 1.000000e+00 : f32
    %66 = vector.broadcast %cst_20 : f32 to vector<128x32xf32>
    %67 = arith.addf %66, %65 : vector<128x32xf32>
    %68 = arith.divf %66, %67 : vector<128x32xf32>
    %69 = arith.mulf %63, %68 : vector<128x32xf32>
    %70 = vector.shape_cast %69 : vector<128x32xf32> to vector<2x8x8x32xf32>
    %71 = vector.shape_cast %2 : vector<2x8x1xf32> to vector<2x1x8x1xf32>
    %72 = vector.broadcast %71 : vector<2x1x8x1xf32> to vector<2x8x8x32xf32>
    %73 = arith.mulf %70, %72 : vector<2x8x8x32xf32>
    %cst_21 = arith.constant dense<0.000000e+00> : vector<2x8x32xf32>
    %74 = vector.multi_reduction <add>, %73, %cst_21 [2] : vector<2x8x8x32xf32> to vector<2x8x32xf32>
    %75 = vector.shape_cast %74 : vector<2x8x32xf32> to vector<16x32xf32>
    %76 = vector.extract_strided_slice %5 {offsets = [0, 0], sizes = [32, 64], strides = [1, 1]} : vector<64x64xf32> to vector<32x64xf32>
    %cst_22 = arith.constant dense<0.000000e+00> : vector<16x64xf32>
    %77 = tpu.matmul %35, %76, %cst_22 {dimension_numbers = #tpu.dot_dimension_numbers<[1], [0], [0], [1], [0, 0, 1, 1], [], []>} : vector<16x32xf32>, vector<32x64xf32>, vector<16x64xf32> -> vector<16x64xf32>
    %78 = vector.extract_strided_slice %5 {offsets = [32, 0], sizes = [32, 64], strides = [1, 1]} : vector<64x64xf32> to vector<32x64xf32>
    %cst_23 = arith.constant dense<0.000000e+00> : vector<16x64xf32>
    %79 = tpu.matmul %75, %78, %cst_23 {dimension_numbers = #tpu.dot_dimension_numbers<[1], [0], [0], [1], [0, 0, 1, 1], [], []>} : vector<16x32xf32>, vector<32x64xf32>, vector<16x64xf32> -> vector<16x64xf32>
    %80 = arith.addf %77, %79 : vector<16x64xf32>
    %81 = vector.broadcast %10 : vector<1x64xf32> to vector<16x64xf32>
    %82 = arith.addf %80, %81 : vector<16x64xf32>
    %83 = arith.negf %82 : vector<16x64xf32>
    %84 = math.exp %83 : vector<16x64xf32>
    %cst_24 = arith.constant 1.000000e+00 : f32
    %85 = vector.broadcast %cst_24 : f32 to vector<16x64xf32>
    %86 = arith.addf %85, %84 : vector<16x64xf32>
    %87 = arith.divf %85, %86 : vector<16x64xf32>
    %88 = arith.mulf %82, %87 : vector<16x64xf32>
    %cst_25 = arith.constant dense<0.000000e+00> : vector<16x32xf32>
    %89 = tpu.matmul %88, %6, %cst_25 {dimension_numbers = #tpu.dot_dimension_numbers<[1], [0], [0], [1], [0, 0, 1, 1], [], []>} : vector<16x64xf32>, vector<64x32xf32>, vector<16x32xf32> -> vector<16x32xf32>
    %90 = vector.broadcast %11 : vector<1x32xf32> to vector<16x32xf32>
    %91 = arith.addf %89, %90 : vector<16x32xf32>
    %92 = arith.addf %35, %91 : vector<16x32xf32>
    %93 = vector.shape_cast %92 : vector<16x32xf32> to vector<2x8x32xf32>
    %cst_26 = arith.constant dense<0.000000e+00> : vector<2x1xf32>
    %94 = vector.multi_reduction <add>, %2, %cst_26 [1] : vector<2x8x1xf32> to vector<2x1xf32>
    %cst_27 = arith.constant 9.99999971E-10 : f32
    %95 = vector.broadcast %cst_27 : f32 to vector<2x1xf32>
    %96 = arith.maximumf %94, %95 : vector<2x1xf32>
    %97 = vector.broadcast %2 : vector<2x8x1xf32> to vector<2x8x32xf32>
    %98 = arith.mulf %93, %97 : vector<2x8x32xf32>
    %cst_28 = arith.constant dense<0.000000e+00> : vector<2x32xf32>
    %99 = vector.multi_reduction <add>, %98, %cst_28 [1] : vector<2x8x32xf32> to vector<2x32xf32>
    %100 = vector.broadcast %96 : vector<2x1xf32> to vector<2x32xf32>
    %101 = arith.divf %99, %100 : vector<2x32xf32>
    tpu.wait_dma2 semaphore(%arg7 : memref<!tpu.dma_semaphore, #tpu.memory_space<semaphore_mem>>) src(%arg4 : memref<40x1408xbf16, #tpu.memory_space<any>>) dst(%arg6 : memref<40x1408xbf16, #tpu.memory_space<vmem>>)
    %c0_29 = arith.constant 0 : index
    %c0_30 = arith.constant 0 : index
    %102 = vector.load %arg6[%c0_29, %c0_30] : memref<40x1408xbf16, #tpu.memory_space<vmem>>, vector<32x1408xbf16>
    %c32_31 = arith.constant 32 : index
    %c0_32 = arith.constant 0 : index
    %103 = vector.load %arg6[%c32_31, %c0_32] : memref<40x1408xbf16, #tpu.memory_space<vmem>>, vector<1x1408xbf16>
    %104 = arith.extf %103 : vector<1x1408xbf16> to vector<1x1408xf32>
    %105 = arith.truncf %101 : vector<2x32xf32> to vector<2x32xbf16>
    %cst_33 = arith.constant dense<0.000000e+00> : vector<2x1408xf32>
    %106 = tpu.matmul %105, %102, %cst_33 {dimension_numbers = #tpu.dot_dimension_numbers<[1], [0], [0], [1], [0, 0, 1, 1], [], []>} : vector<2x32xbf16>, vector<32x1408xbf16>, vector<2x1408xf32> -> vector<2x1408xf32>
    %107 = vector.broadcast %104 : vector<1x1408xf32> to vector<2x1408xf32>
    %108 = arith.addf %106, %107 : vector<2x1408xf32>
    %c0_34 = arith.constant 0 : index
    %c0_35 = arith.constant 0 : index
    %109 = vector.load %arg5[%c0_34, %c0_35] : memref<2x1408xf32, #tpu.memory_space<vmem>>, vector<2x1408xf32>
    tpu.vector_store %arg5[%c0_34, %c0_35], %108 {strides = array<i32>} : memref<2x1408xf32, #tpu.memory_space<vmem>>, vector<2x1408xf32>,
    return
  }
}

</mosaic_0001>

<bundles_post_ra>
// kernel: egnn_cleavage_forward.1
= control target key start
LH: loop header
LB: loop body
LE: loop exit
PB: predicated region body
PF: predicated region fallthrough
CT: control target
= control target key end

     0   :  { %10 = vsyncpa [#allocation5], 0  ;;  %s3656_s0 = inlined_call_operand.vmem [shape: f32[2,8,32], index: 0, kind: input, shape index: {}]   ;;  %s3657_s1 = inlined_call_operand.vmem [shape: f32[2,8,3], index: 1, kind: input, shape index: {}]   ;;  %s3658_s2 = inlined_call_operand.vmem [shape: f32[2,8,1], index: 2, kind: input, shape index: {}]   ;;  %s3659_s3 = inlined_call_operand.vmem [shape: f32[200,64], index: 3, kind: input, shape index: {}]   ;;  %s3660_s4 = inlined_call_operand.vmem [shape: bf16[40,1408], index: 4, kind: input, shape index: {}]   ;;  %s3661_s5 = inlined_call_operand.hbm [shape: f32[2,1408], index: 5, kind: output, shape index: {}]  }
   0x1   :  { %v57_v0 = vld [vmem:[%s3660_s4] sm:$0xff]  ;;  %v59_v1 = vld [vmem:[%s3660_s4 + $0x8] sm:$0xff]  ;;  %v61_v2 = vld [vmem:[%s3660_s4 + $0x10] sm:$0xff] }
   0x2   :  { %58 = vst [vmem:[#allocation2] sm:$0xff] %v57_v0  ;;  %60 = vst [vmem:[#allocation2 + $0x8] sm:$0xff] %v59_v1  ;;  %v63_v3 = vld [vmem:[%s3660_s4 + $0x18] sm:$0xff]  ;;  %v65_v4 = vld [vmem:[%s3660_s4 + $0x20] sm:$0xff] }
   0x3   :  { %62 = vst [vmem:[#allocation2 + $0x10] sm:$0xff] %v61_v2  ;;  %64 = vst [vmem:[#allocation2 + $0x18] sm:$0xff] %v63_v3  ;;  %v67_v5 = vld [vmem:[%s3660_s4 + $0x28] sm:$0xff]  ;;  %v69_v6 = vld [vmem:[%s3660_s4 + $0x30] sm:$0xff] }
   0x4   :  { %66 = vst [vmem:[#allocation2 + $0x20] sm:$0xff] %v65_v4  ;;  %v71_v7 = vld [vmem:[%s3660_s4 + $0x38] sm:$0xff]  ;;  %68 = vst [vmem:[#allocation2 + $0x28] sm:$0xff] %v67_v5  ;;  %v73_v8 = vld [vmem:[%s3660_s4 + $0x40] sm:$0xff] }
   0x5   :  { %70 = vst [vmem:[#allocation2 + $0x30] sm:$0xff] %v69_v6  ;;  %72 = vst [vmem:[#allocation2 + $0x38] sm:$0xff] %v71_v7  ;;  %v75_v9 = vld [vmem:[%s3660_s4 + $0x48] sm:$0xff]  ;;  %v77_v10 = vld [vmem:[%s3660_s4 + $0x50] sm:$0xff] }
   0x6   :  { %74 = vst [vmem:[#allocation2 + $0x40] sm:$0xff] %v73_v8  ;;  %76 = vst [vmem:[#allocation2 + $0x48] sm:$0xff] %v75_v9  ;;  %v79_v11 = vld [vmem:[%s3660_s4 + $0x58] sm:$0xff]  ;;  %v81_v12 = vld [vmem:[%s3660_s4 + $0x60] sm:$0xff] }
   0x7   :  { %78 = vst [vmem:[#allocation2 + $0x50] sm:$0xff] %v77_v10  ;;  %v83_v13 = vld [vmem:[%s3660_s4 + $0x68] sm:$0xff]  ;;  %80 = vst [vmem:[#allocation2 + $0x58] sm:$0xff] %v79_v11  ;;  %v85_v14 = vld [vmem:[%s3660_s4 + $0x70] sm:$0xff] }
   0x8   :  { %82 = vst [vmem:[#allocation2 + $0x60] sm:$0xff] %v81_v12  ;;  %84 = vst [vmem:[#allocation2 + $0x68] sm:$0xff] %v83_v13  ;;  %v87_v15 = vld [vmem:[%s3660_s4 + $0x78] sm:$0xff]  ;;  %v89_v16 = vld [vmem:[%s3660_s4 + $0x80] sm:$0xff] }
   0x9   :  { %86 = vst [vmem:[#allocation2 + $0x70] sm:$0xff] %v85_v14  ;;  %88 = vst [vmem:[#allocation2 + $0x78] sm:$0xff] %v87_v15  ;;  %v91_v17 = vld [vmem:[%s3660_s4 + $0x88] sm:$0xff]  ;;  %v93_v18 = vld [vmem:[%s3660_s4 + $0x90] sm:$0xff] }
   0xa   :  { %90 = vst [vmem:[#allocation2 + $0x80] sm:$0xff] %v89_v16  ;;  %v95_v19 = vld [vmem:[%s3660_s4 + $0x98] sm:$0xff]  ;;  %92 = vst [vmem:[#allocation2 + $0x88] sm:$0xff] %v91_v17  ;;  %v97_v20 = vld [vmem:[%s3660_s4 + $0xa0] sm:$0xff] }
   0xb   :  { %94 = vst [vmem:[#allocation2 + $0x90] sm:$0xff] %v93_v18  ;;  %96 = vst [vmem:[#allocation2 + $0x98] sm:$0xff] %v95_v19  ;;  %v99_v21 = vld [vmem:[%s3660_s4 + $0xa8] sm:$0xff]  ;;  %v101_v22 = vld [vmem:[%s3660_s4 + $0xb0] sm:$0xff] }
   0xc   :  { %98 = vst [vmem:[#allocation2 + $0xa0] sm:$0xff] %v97_v20  ;;  %100 = vst [vmem:[#allocation2 + $0xa8] sm:$0xff] %v99_v21  ;;  %v103_v23 = vld [vmem:[%s3660_s4 + $0xb8] sm:$0xff]  ;;  %v105_v24 = vld [vmem:[%s3660_s4 + $0xc0] sm:$0xff] }
   0xd   :  { %102 = vst [vmem:[#allocation2 + $0xb0] sm:$0xff] %v101_v22  ;;  %v107_v25 = vld [vmem:[%s3660_s4 + $0xc8] sm:$0xff]  ;;  %104 = vst [vmem:[#allocation2 + $0xb8] sm:$0xff] %v103_v23  ;;  %v109_v26 = vld [vmem:[%s3660_s4 + $0xd0] sm:$0xff] }
   0xe   :  { %106 = vst [vmem:[#allocation2 + $0xc0] sm:$0xff] %v105_v24  ;;  %108 = vst [vmem:[#allocation2 + $0xc8] sm:$0xff] %v107_v25  ;;  %v2400_v27 = vld [vmem:[%s3660_s4 + $0xd8] sm:$0xf] }
   0xf   :  { %110 = vst [vmem:[#allocation2 + $0xd0] sm:$0xff] %v109_v26  ;;  %121 = vst [vmem:[#allocation2 + $0xd8] sm:$0xf] %v2400_v27 }
  0x10   :  { %125 = vsyncadd [#allocation3], 3520  ;;  %v132_v28 = vld [vmem:[%s3659_s3] sm:$0xff]  ;;  %v133_v29 = vld [vmem:[%s3659_s3 + $0x8] sm:$0xff]  ;;  %vm517_vm0 = vcmask 261120   ;;  %v167_v30 = vlaneseq  ;;  %s2900_s12 = smov 127  }
  0x11   :  { %v2636_v31 = vpack.c.bf16 %v133_v29, %v132_v28  ;;  %v134_v32 = vld [vmem:[%s3659_s3 + $0x10] sm:$0xff]  ;;  %v135_v33 = vld [vmem:[%s3659_s3 + $0x18] sm:$0xff]  ;;  %v126_v34 = vld [vmem:[%s3656_s0] sm:$0xff]  ;;  %v2899_v36 = vmov 1966171168   ;;  %s2901_s13 = smov 126  }
  0x12   :  { %v2640_v35 = vpack.c.bf16 %v135_v33, %v134_v32  ;;  %2552 = vmatprep.mubr.msk.f32.mxu0 %vm517_vm0, %v126_v34  ;;  %v165_v37 = vunpack.c.l.s4 %v2899_v36  ;;  %v3038_v38 = vshrl.u32 %v167_v30, 7  ;;  %v128_v39 = vld [vmem:[%s3657_s1] sm:$0xff]  ;;  %v127_v43 = vld [vmem:[%s3656_s0 + $0x8] sm:$0xff]  ;;  %v2902_v16 = vmov 0   ;;  %s2903_s19 = smov 96  }
  0x13   :  { %2637 = vmatprep.subr.bf16.mxu0 %v2636_v31  ;;  %v163_v41 = vcombine.high %v128_v39, %v128_v39  ;;  %v3084_v6 = vld [vmem:[%s3657_s1 + $0x8] sm:$0xff]  ;;  %2695 = vset.pattern.permute.xlu0 %v2902_v16  ;;  %vm1795_vm1 = vcmask 7168   ;;  %vm1512_vm2 = vcmask 1041409   ;;  %vm1514_vm3 = vcmask 1042434  }
  0x14   :  { %2639 = vmatpush3.bf16.msra.mxu0 %v2636_v31  ;;  %v166_v40 = vunpack.c.0.s8 %v165_v37  ;;  %v3051_v45 = vsub.s32 0, %v3038_v38  ;;  %2696 = vset.pattern.permute.xlu1 %v2902_v16  ;;  %v212_v22 = vcombine.high %v3084_v6, %v3084_v6  ;;  %vm1516_vm4 = vcmask 1043459  }
  0x15   :  { %2641 = vmatprep.subr.bf16.mxu0 %v2640_v35  ;;  %vm1518_vm5 = vcmask 1044484   ;;  %vm1520_vm6 = vcmask 1045509   ;;  %vm1522_vm7 = vcmask 1046534   ;;  %vm1524_vm8 = vcmask 1047559  }
  0x16   :  { %v3044_v42 = vsub.s32 %v166_v40, %v3038_v38  ;;  %vm1711_vm9 = vcmask 523264  }
  0x18   :  { %2643 = vmatpush3.bf16.msra.mxu0 %v2640_v35  ;;  %v170_v44 = vrot.slane %v128_v39, %v3044_v42  ;;  %v177_v46 = vrot.slane %v163_v41, %v3044_v42  ;;  %v219_v11 = vrot.slane %v3084_v6, %v3044_v42  ;;  %v226_v27 = vrot.slane %v212_v22, %v3044_v42 }
  0x1a   :  { %v186_v47 = vrot.slane %v170_v44, %v3044_v42  ;;  %v193_v48 = vrot.slane %v177_v46, %v3044_v42  ;;  %v178_v49 = vcombine.high %v170_v44, %v170_v44  ;;  %v179_v50 = vcombine.high %v177_v46, %v177_v46 }
  0x1b   :  { %2553 = vmatmul.mubr.msk.f32.vlgmr.msra.gmra.mrb[0].mxu0 %vm517_vm0, %v127_v43  ;;  %v227_v12 = vcombine.high %v219_v11, %v219_v11  ;;  %v235_v17 = vrot.slane %v219_v11, %v3044_v42  ;;  %v228_v32 = vcombine.high %v226_v27, %v226_v27  ;;  %v242_v36 = vrot.slane %v226_v27, %v3044_v42 }
  0x1c   :  { %v264_v51 = vrot.slane %v186_v47, %v3051_v45  ;;  %v280_v52 = vrot.slane %v193_v48, %v3051_v45  ;;  %v200_v53 = vrot.slane %v178_v49, %v3044_v42  ;;  %v208_v54 = vcombine.high %v186_v47, %v186_v47 }
  0x1d   :  { %v207_v55 = vrot.slane %v179_v50, %v3044_v42  ;;  %v209_v7 = vcombine.high %v193_v48, %v193_v48  ;;  %v249_v20 = vrot.slane %v227_v12, %v3044_v42  ;;  %v296_v21 = vrot.slane %v235_v17, %v3051_v45 }
  0x1e   :  { %v341_v56 = vsub.f32 %v264_v51, %v128_v39  ;;  %v345_v57 = vsub.f32 %v280_v52, %v128_v39  ;;  %v268_v58 = vrot.slane %v200_v53, %v3051_v45  ;;  %v272_v62 = vrot.slane %v208_v54, %v3051_v45 }
  0x1f   :  { %v284_v59 = vrot.slane %v207_v55, %v3051_v45  ;;  %v210_v1 = vcombine.high %v200_v53, %v200_v53  ;;  %v211_v10 = vcombine.high %v207_v55, %v207_v55  ;;  %v288_v13 = vrot.slane %v209_v7, %v3051_v45 }
  0x20   :  { %v3063_v60 = vmul.f32 %v341_v56, %v341_v56  ;;  %v342_v61 = vsub.f32 %v268_v58, %v128_v39  ;;  %v3068_v63 = vmul.f32 %v345_v57, %v345_v57  ;;  %v343_v3 = vsub.f32 %v272_v62, %v128_v39 }
  0x21   :  { %v346_v0 = vsub.f32 %v284_v59, %v128_v39  ;;  %v276_v5 = vrot.slane %v210_v1, %v3051_v45  ;;  %v292_v15 = vrot.slane %v211_v10, %v3051_v45  ;;  %v347_v18 = vsub.f32 %v288_v13, %v128_v39 }
  0x22   :  { %389 = vrot.lane.b32.xlu0 %v3063_v60, %s2900_s12  ;;  %453 = vrot.lane.b32.xlu1 %v3063_v60, %s2901_s13  ;;  %v3072_v2 = vmul.f32 %v342_v61, %v342_v61  ;;  %v3088_v8 = vmul.f32 %v343_v3, %v343_v3  ;;  %v300_v25 = vrot.slane %v249_v20, %v3051_v45 }
  0x23   :  { %v3078_v4 = vmul.f32 %v346_v0, %v346_v0  ;;  %v344_v9 = vsub.f32 %v276_v5, %v128_v39  ;;  %v348_v19 = vsub.f32 %v292_v15, %v128_v39  ;;  %v3115_v23 = vmul.f32 %v347_v18, %v347_v18 }
  0x24   :  { %v349_v26 = vsub.f32 %v296_v21, %v3084_v6  ;;  %v257_v28 = vcombine.high %v235_v17, %v235_v17  ;;  %v350_v29 = vsub.f32 %v300_v25, %v3084_v6  ;;  %v259_v30 = vcombine.high %v249_v20, %v249_v20 }
  0x25   :  { %v3099_v14 = vmul.f32 %v344_v9, %v344_v9  ;;  %v3119_v24 = vmul.f32 %v348_v19, %v348_v19  ;;  %v256_v40 = vrot.slane %v228_v32, %v3044_v42  ;;  %v312_v41 = vrot.slane %v242_v36, %v3051_v45 }
  0x26   :  { %397 = vrot.lane.b32.xlu0 %v3068_v63, %s2900_s12  ;;  %455 = vrot.lane.b32.xlu1 %v3072_v2, %s2901_s13  ;;  %v3129_v31 = vmul.f32 %v349_v26, %v349_v26  ;;  %v304_v33 = vrot.slane %v257_v28, %v3051_v45  ;;  %v3136_v34 = vmul.f32 %v350_v29, %v350_v29 }
  0x27   :  { %v308_v35 = vrot.slane %v259_v30, %v3051_v45  ;;  %v316_v46 = vrot.slane %v256_v40, %v3051_v45  ;;  %v258_v47 = vcombine.high %v242_v36, %v242_v36  ;;  %v260_v49 = vcombine.high %v256_v40, %v256_v40 }
  0x28   :  { %v351_v37 = vsub.f32 %v304_v33, %v3084_v6  ;;  %v353_v50 = vsub.f32 %v312_v41, %v3084_v6 }
  0x29   :  { %v352_v39 = vsub.f32 %v308_v35, %v3084_v6  ;;  %v354_v48 = vsub.f32 %v316_v46, %v3084_v6  ;;  %v320_v51 = vrot.slane %v258_v47, %v3051_v45  ;;  %v324_v53 = vrot.slane %v260_v49, %v3051_v45  ;;  %v131_v46 = vld [vmem:[%s3658_s2 + $0x8] sm:$0xff] }
  0x2a   :  { %391 = vrot.lane.b32.xlu0 %v3072_v2, %s2900_s12  ;;  %399 = vrot.lane.b32.xlu1 %v3078_v4, %s2900_s12  ;;  %v3150_v43 = vmul.f32 %v351_v37, %v351_v37  ;;  %v3171_v54 = vmul.f32 %v353_v50, %v353_v50  ;;  %v1803_v47 = vsel %vm1795_vm1, %v131_v46, 0.0 }
  0x2b   :  { %v3154_v44 = vmul.f32 %v352_v39, %v352_v39  ;;  %v3168_v52 = vmul.f32 %v354_v48, %v354_v48  ;;  %v356_v55 = vsub.f32 %v324_v53, %v3084_v6  ;;  %v355_v56 = vsub.f32 %v320_v51, %v3084_v6 }
  0x2c   :  { %v1804_v48 = vrot.slane %v1803_v47, 4 }
  0x2d   :  { %v3181_v57 = vmul.f32 %v356_v55, %v356_v55  ;;  %v3185_v58 = vmul.f32 %v355_v56, %v355_v56  ;;  %v130_v56 = vld [vmem:[%s3658_s2] sm:$0xff] }
  0x2e   :  { %393 = vrot.lane.b32.xlu0 %v3088_v8, %s2900_s12  ;;  %463 = vrot.lane.b32.xlu1 %v3078_v4, %s2901_s13  ;;  %v1805_v50 = vadd.f32 %v1804_v48, %v1803_v47 }
  0x30   :  { %v1806_v53 = vrot.slane %v1805_v50, 2 }
  0x32   :  { %457 = vrot.lane.b32.xlu0 %v3088_v8, %s2901_s13  ;;  %395 = vrot.lane.b32.xlu1 %v3099_v14, %s2900_s12 }
  0x36   :  { %461 = vrot.lane.b32.xlu0 %v3068_v63, %s2901_s13  ;;  %459 = vrot.lane.b32.xlu1 %v3099_v14, %s2901_s13 }
  0x3a   :  { %401 = vrot.lane.b32.xlu0 %v3115_v23, %s2900_s12  ;;  %403 = vrot.lane.b32.xlu1 %v3119_v24, %s2900_s12 }
  0x3e   :  { %465 = vrot.lane.b32.xlu0 %v3115_v23, %s2901_s13  ;;  %467 = vrot.lane.b32.xlu1 %v3119_v24, %s2901_s13 }
  0x42   :  { %405 = vrot.lane.b32.xlu0 %v3129_v31, %s2900_s12  ;;  %407 = vrot.lane.b32.xlu1 %v3136_v34, %s2900_s12 }
  0x46   :  { %469 = vrot.lane.b32.xlu0 %v3129_v31, %s2901_s13  ;;  %471 = vrot.lane.b32.xlu1 %v3136_v34, %s2901_s13 }
  0x4a   :  { %409 = vrot.lane.b32.xlu0 %v3150_v43, %s2900_s12  ;;  %411 = vrot.lane.b32.xlu1 %v3154_v44, %s2900_s12 }
  0x4e   :  { %473 = vrot.lane.b32.xlu0 %v3150_v43, %s2901_s13  ;;  %475 = vrot.lane.b32.xlu1 %v3154_v44, %s2901_s13 }
  0x52   :  { %415 = vrot.lane.b32.xlu1 %v3168_v52, %s2900_s12  ;;  %413 = vrot.lane.b32.xlu0 %v3171_v54, %s2900_s12 }
  0x56   :  { %479 = vrot.lane.b32.xlu1 %v3168_v52, %s2901_s13  ;;  %477 = vrot.lane.b32.xlu0 %v3171_v54, %s2901_s13 }
  0x5a   :  { %419 = vrot.lane.b32.xlu1 %v3181_v57, %s2900_s12  ;;  %417 = vrot.lane.b32.xlu0 %v3185_v58, %s2900_s12 }
  0x5e   :  { %483 = vrot.lane.b32.xlu1 %v3181_v57, %s2901_s13  ;;  %481 = vrot.lane.b32.xlu0 %v3185_v58, %s2901_s13 }
  0x94   :  { %v390_v59 = vpop.permute.xlu0 %389  ;;  %v454_v61 = vpop.permute.xlu1 %453 }
  0x95   :  { %v437_v62 = vadd.f32 %v390_v59, %v3063_v60 }
  0x97   :  { %v501_v0 = vadd.f32 %v454_v61, %v437_v62 }
  0x98   :  { %v398_v1 = vpop.permute.xlu0 %397  ;;  %v456_v3 = vpop.permute.xlu1 %455 }
  0x99   :  { %803 = vperm.xlu0 %2695, %v501_v0   ;;  %v441_v60 = vadd.f32 %v398_v1, %v3068_v63  ;;  %v1807_v0 = vadd.f32 %v1806_v53, %v1805_v50 }
  0x9c   :  { %v392_v5 = vpop.permute.xlu0 %391  ;;  %v400_v6 = vpop.permute.xlu1 %399 }
  0x9d   :  { %v438_v7 = vadd.f32 %v392_v5, %v3072_v2  ;;  %v442_v9 = vadd.f32 %v400_v6, %v3078_v4 }
  0x9f   :  { %v502_v10 = vadd.f32 %v456_v3, %v438_v7  ;;  %v1808_v7 = vrot.slane %v1807_v0, 1 }
  0xa0   :  { %v394_v11 = vpop.permute.xlu0 %393  ;;  %v464_v12 = vpop.permute.xlu1 %463 }
  0xa1   :  { %v439_v13 = vadd.f32 %v394_v11, %v3088_v8  ;;  %v506_v15 = vadd.f32 %v464_v12, %v442_v9  ;;  %808 = vperm.xlu1 %2696, %v502_v10  }
  0xa4   :  { %v458_v17 = vpop.permute.xlu0 %457  ;;  %v396_v18 = vpop.permute.xlu1 %395 }
  0xa5   :  { %v503_v19 = vadd.f32 %v458_v17, %v439_v13  ;;  %v440_v20 = vadd.f32 %v396_v18, %v3099_v14  ;;  %v1809_v13 = vadd.f32 %v1808_v7, %v1807_v0 }
  0xa7   :  { %813 = vperm.xlu1 %2696, %v503_v19  }
  0xa8   :  { %v462_v21 = vpop.permute.xlu0 %461  ;;  %v460_v2 = vpop.permute.xlu1 %459 }
  0xa9   :  { %v505_v22 = vadd.f32 %v462_v21, %v441_v60  ;;  %v504_v25 = vadd.f32 %v460_v2, %v440_v20  ;;  %v1811_v60 = vmax.f32 %v1809_v13, 1e-09  ;;  %v137_v21 = vld [vmem:[%s3659_s3 + $0x28] sm:$0xff] }
  0xab   :  { %823 = vperm.xlu0 %2695, %v505_v22  }
  0xac   :  { %v402_v4 = vpop.permute.xlu0 %401  ;;  %v404_v32 = vpop.permute.xlu1 %403 }
  0xad   :  { %v443_v26 = vadd.f32 %v402_v4, %v3115_v23  ;;  %v444_v5 = vadd.f32 %v404_v32, %v3119_v24  ;;  %v139_v4 = vld [vmem:[%s3659_s3 + $0x38] sm:$0xff] }
  0xaf   :  { %818 = vperm.xlu0 %2695, %v504_v25  }
  0xb0   :  { %v466_v8 = vpop.permute.xlu0 %465  ;;  %v468_v35 = vpop.permute.xlu1 %467 }
  0xb1   :  { %v507_v27 = vadd.f32 %v466_v8, %v443_v26  ;;  %v508_v10 = vadd.f32 %v468_v35, %v444_v5 }
  0xb3   :  { %833 = vperm.xlu0 %2695, %v507_v27  }
  0xb4   :  { %v406_v28 = vpop.permute.xlu0 %405  ;;  %v408_v39 = vpop.permute.xlu1 %407 }
  0xb5   :  { %v445_v29 = vadd.f32 %v406_v28, %v3129_v31  ;;  %v446_v11 = vadd.f32 %v408_v39, %v3136_v34  ;;  %v136_v34 = vld [vmem:[%s3659_s3 + $0x20] sm:$0xff] }
  0xb6   :  { %v2644_v22 = vpack.c.bf16 %v137_v21, %v136_v34 }
  0xb8   :  { %v470_v63 = vpop.permute.xlu0 %469  ;;  %v472_v23 = vpop.permute.xlu1 %471  ;;  %2645 = vmatprep.subr.bf16.mxu1 %v2644_v22 }
  0xb9   :  { %v509_v30 = vadd.f32 %v470_v63, %v445_v29  ;;  %v510_v17 = vadd.f32 %v472_v23, %v446_v11  ;;  %2647 = vmatpush3.bf16.msra.mxu1 %v2644_v22 }
  0xbb   :  { %843 = vperm.xlu0 %2695, %v509_v30  }
  0xbc   :  { %v410_v14 = vpop.permute.xlu0 %409  ;;  %v412_v40 = vpop.permute.xlu1 %411 }
  0xbd   :  { %v447_v33 = vadd.f32 %v410_v14, %v3150_v43  ;;  %v448_v18 = vadd.f32 %v412_v40, %v3154_v44 }
  0xc0   :  { %v474_v36 = vpop.permute.xlu0 %473  ;;  %v476_v41 = vpop.permute.xlu1 %475 }
  0xc1   :  { %v511_v37 = vadd.f32 %v474_v36, %v447_v33  ;;  %v512_v20 = vadd.f32 %v476_v41, %v448_v18 }
  0xc3   :  { %853 = vperm.xlu0 %2695, %v511_v37  }
  0xc4   :  { %v416_v31 = vpop.permute.xlu1 %415  ;;  %v414_v3 = vpop.permute.xlu0 %413 }
  0xc5   :  { %v450_v51 = vadd.f32 %v416_v31, %v3168_v52  ;;  %v1796_v52 = vsel %vm1795_vm1, %v130_v56, 0.0 }
  0xc6   :  { %v1797_v9 = vrot.slane %v1796_v52, 4 }
  0xc8   :  { %v480_v49 = vpop.permute.xlu1 %479  ;;  %v478_v12 = vpop.permute.xlu0 %477 }
  0xc9   :  { %v514_v59 = vadd.f32 %v480_v49, %v450_v51 }
  0xcc   :  { %v420_v43 = vpop.permute.xlu1 %419  ;;  %v418_v19 = vpop.permute.xlu0 %417 }
  0xcd   :  { %v452_v62 = vadd.f32 %v420_v43, %v3181_v57  ;;  %v1798_v57 = vadd.f32 %v1797_v9, %v1796_v52  ;;  %v451_v25 = vadd.f32 %v418_v19, %v3185_v58 }
  0xcf   :  { %v1799_v24 = vrot.slane %v1798_v57, 2 }
  0xd0   :  { %v484_v1 = vpop.permute.xlu1 %483  ;;  %v482_v26 = vpop.permute.xlu0 %481 }
  0xd1   :  { %v516_v6 = vadd.f32 %v484_v1, %v452_v62  ;;  %v1800_v44 = vadd.f32 %v1799_v24, %v1798_v57  ;;  %v515_v28 = vadd.f32 %v482_v26, %v451_v25  ;;  %v3277_v57 = vld [vmem:[%s3659_s3 + $0xc1] ss:$0 sm:$0xff] }
  0xd3   :  { %v1801_v27 = vrot.slane %v1800_v44, 1 }
  0xd5   :  { %v1802_v29 = vadd.f32 %v1801_v27, %v1800_v44 }
  0xd7   :  { %v1810_v58 = vmax.f32 %v1802_v29, 1e-09 }
  0xee   :  { %v3209_v55 = vpop.f32.mrb[0].mxu0 }
  0xef   :  { %781 = vrot.lane.b32.xlu0 %v3209_v55, %s2903_s19  ;;  %v590_v61 = vpop.f32.mrb[1].mxu0  ;;  %v3240_v23 = vrot.slane %v3209_v55, %v3044_v42  ;;  %v650_v47 = vcombine.high %v3209_v55, %v3209_v55 }
  0xf0   :  { %779 = vrot.lane.b32.xlu1 %v590_v61, %s2903_s19  ;;  %v601_v14 = vcombine.high %v590_v61, %v590_v61  ;;  %v608_v33 = vrot.slane %v590_v61, %v3044_v42 }
  0xf1   :  { %v673_v48 = vrot.slane %v3240_v23, %v3044_v42 }
  0xf2   :  { %v3236_v36 = vrot.slane %v601_v14, %v3044_v42  ;;  %v616_v37 = vcombine.high %v608_v33, %v608_v33  ;;  %v624_v40 = vrot.slane %v608_v33, %v3044_v42 }
  0xf3   :  { %868 = vperm.xlu0 %2695, %v514_v59   ;;  %v3256_v59 = vld [vmem:[%s3659_s3 + $0xc0] ss:$0 sm:$0xff]  ;;  %v695_v61 = vcombine.high %v673_v48, %v673_v48  ;;  %v734_v62 = vrot.slane %v673_v48, %v3051_v45 }
  0xf4   :  { %828 = vperm.xlu1 %2696, %v506_v15   ;;  %v449_v15 = vadd.f32 %v414_v3, %v3171_v54  ;;  %v138_v54 = vld [vmem:[%s3659_s3 + $0x30] sm:$0xff]  ;;  %v631_v41 = vrot.slane %v3236_v36, %v3044_v42  ;;  %v646_v49 = vcombine.high %v624_v40, %v624_v40  ;;  %v702_v55 = vrot.slane %v624_v40, %v3051_v45 }
  0xf5   :  { %v2648_v8 = vpack.c.bf16 %v139_v4, %v138_v54  ;;  %v617_v26 = vcombine.high %v3236_v36, %v3236_v36  ;;  %v742_v29 = vrot.slane %v695_v61, %v3051_v45 }
  0xf6   :  { %v513_v2 = vadd.f32 %v478_v12, %v449_v15  ;;  %v647_v50 = vcombine.high %v631_v41, %v631_v41  ;;  %v710_v1 = vrot.slane %v646_v49, %v3051_v45  ;;  %v718_v52 = vrot.slane %v631_v41, %v3051_v45 }
  0xf7   :  { %878 = vperm.xlu0 %2695, %v516_v6   ;;  %2649 = vmatprep.subr.bf16.mxu1 %v2648_v8  ;;  %v645_v40 = vrot.slane %v617_v26, %v3044_v42  ;;  %v665_v41 = vcombine.high %v3240_v23, %v3240_v23 }
  0xf8   :  { %838 = vperm.xlu1 %2696, %v508_v10   ;;  %2651 = vmatpush3.bf16.msra.mxu1 %v2648_v8  ;;  %v726_v5 = vrot.slane %v647_v50, %v3051_v45 }
  0xf9   :  { %v649_v49 = vcombine.high %v645_v40, %v645_v40  ;;  %v687_v50 = vrot.slane %v665_v41, %v3044_v42  ;;  %v722_v23 = vrot.slane %v645_v40, %v3051_v45 }
  0xfb   :  { %1365 = vperm.xlu0 %2695, %v131_v46   ;;  %v638_v46 = vrot.slane %v616_v37, %v3044_v42 }
  0xfc   :  { %848 = vperm.xlu1 %2696, %v510_v17  }
  0xfd   :  { %v648_v43 = vcombine.high %v638_v46, %v638_v46  ;;  %v706_v0 = vrot.slane %v638_v46, %v3051_v45 }
  0xff   :  { %1835 = vperm.xlu0 %2695, %v1811_v60   ;;  %v714_v3 = vrot.slane %v648_v43, %v3051_v45 }
 0x100   :  { %858 = vperm.xlu1 %2696, %v512_v20  }
 0x104   :  { %863 = vperm.xlu1 %2696, %v513_v2  }
 0x108   :  { %873 = vperm.xlu1 %2696, %v515_v28  }
 0x10c   :  { %1360 = vperm.xlu1 %2696, %v130_v56   ;;  %v3251_v56 = vrot.slane %v650_v47, %v3044_v42 }
 0x10e   :  { %v666_v46 = vcombine.high %v3251_v56, %v3251_v56 }
 0x110   :  { %1830 = vperm.xlu1 %2696, %v1810_v58   ;;  %v694_v43 = vrot.slane %v666_v46, %v3044_v42 }
 0x118   :  { %v804_v63 = vpop.permute.xlu0 %803 }
 0x119   :  { %v885_v7 = vmul.f32 %v3256_v59, %v804_v63 }
 0x120   :  { %v809_v31 = vpop.permute.xlu1 %808 }
 0x121   :  { %v886_v9 = vmul.f32 %v3256_v59, %v809_v31 }
 0x126   :  { %v814_v51 = vpop.permute.xlu1 %813 }
 0x127   :  { %v887_v10 = vmul.f32 %v3256_v59, %v814_v51 }
 0x12a   :  { %v824_v30 = vpop.permute.xlu0 %823 }
 0x12b   :  { %v889_v24 = vmul.f32 %v3256_v59, %v824_v30 }
 0x12e   :  { %v819_v32 = vpop.permute.xlu0 %818 }
 0x12f   :  { %v888_v12 = vmul.f32 %v3256_v59, %v819_v32 }
 0x132   :  { %v834_v35 = vpop.permute.xlu0 %833 }
 0x133   :  { %v891_v19 = vmul.f32 %v3256_v59, %v834_v35 }
 0x13a   :  { %v844_v39 = vpop.permute.xlu0 %843 }
 0x13b   :  { %v893_v2 = vmul.f32 %v3256_v59, %v844_v39 }
 0x142   :  { %v854_v53 = vpop.permute.xlu0 %853 }
 0x143   :  { %v895_v58 = vmul.f32 %v3256_v59, %v854_v53 }
 0x161   :  { %v3272_v13 = vpop.permute.xlu0 %781 }
 0x162   :  { %v3265_v6 = vpop.permute.xlu1 %779  ;;  %v793_v4 = vadd.f32 %v3272_v13, %v734_v62  ;;  %v795_v39 = vadd.f32 %v3272_v13, %v742_v29 }
 0x163   :  { %v785_v11 = vadd.f32 %v3265_v6, %v702_v55  ;;  %v786_v17 = vadd.f32 %v3265_v6, %v706_v0  ;;  %v787_v18 = vadd.f32 %v3265_v6, %v710_v1  ;;  %v788_v60 = vadd.f32 %v3265_v6, %v714_v3 }
 0x164   :  { %v789_v15 = vadd.f32 %v3265_v6, %v718_v52  ;;  %v791_v44 = vadd.f32 %v3265_v6, %v726_v5  ;;  %v909_v37 = vadd.f32 %v893_v2, %v793_v4  ;;  %v911_v48 = vadd.f32 %v895_v58, %v795_v39 }
 0x165   :  { %v901_v20 = vadd.f32 %v885_v7, %v785_v11  ;;  %v902_v34 = vadd.f32 %v886_v9, %v786_v17  ;;  %v903_v21 = vadd.f32 %v887_v10, %v787_v18  ;;  %v904_v22 = vadd.f32 %v888_v12, %v788_v60 }
 0x166   :  { %v905_v54 = vadd.f32 %v889_v24, %v789_v15  ;;  %v907_v35 = vadd.f32 %v891_v19, %v791_v44  ;;  %v3322_v47 = vadd.f32 %v3277_v57, %v909_v37  ;;  %v3330_v55 = vadd.f32 %v3277_v57, %v911_v48 }
 0x167   :  { %v3288_v25 = vadd.f32 %v3277_v57, %v901_v20  ;;  %v3294_v8 = vadd.f32 %v3277_v57, %v902_v34  ;;  %v3297_v27 = vadd.f32 %v3277_v57, %v903_v21  ;;  %v3300_v28 = vadd.f32 %v3277_v57, %v904_v22 }
 0x168   :  { %v3306_v30 = vadd.f32 %v3277_v57, %v905_v54  ;;  %v3319_v31 = vadd.f32 %v3277_v57, %v907_v35  ;;  %v2413_v62 = vmul.f32 -1.442695, %v3322_v47  ;;  %v790_v0 = vadd.f32 %v3265_v6, %v722_v23 }
 0x169   :  { %v2405_v63 = vmul.f32 -1.442695, %v3288_v25  ;;  %v2406_v32 = vmul.f32 -1.442695, %v3294_v8  ;;  %v2407_v14 = vmul.f32 -1.442695, %v3297_v27  ;;  %v730_v3 = vrot.slane %v649_v49, %v3051_v45 }
 0x16a   :  { %v2408_v33 = vmul.f32 -1.442695, %v3300_v28  ;;  %v2409_v36 = vmul.f32 -1.442695, %v3306_v30  ;;  %v2411_v53 = vmul.f32 -1.442695, %v3319_v31  ;;  %v680_v5 = vrot.slane %v3251_v56, %v3044_v42 }
 0x16b   :  { %2699 = vpow2.f32 %v2405_v63  ;;  %v754_v7 = vrot.slane %v694_v43, %v3051_v45  ;;  %v698_v9 = vcombine.high %v694_v43, %v694_v43  ;;  %v738_v10 = vrot.slane %v687_v50, %v3051_v45 }
 0x16c   :  { %2701 = vpow2.f32 %v2406_v32  ;;  %v792_v17 = vadd.f32 %v3265_v6, %v730_v3  ;;  %v2415_v15 = vmul.f32 -1.442695, %v3330_v55  ;;  %v697_v2 = vcombine.high %v687_v50, %v687_v50 }
 0x16d   :  { %2703 = vpow2.f32 %v2407_v14  ;;  %v798_v44 = vadd.f32 %v3272_v13, %v754_v7  ;;  %v762_v63 = vrot.slane %v698_v9, %v3051_v45  ;;  %v794_v35 = vadd.f32 %v3272_v13, %v738_v10 }
 0x16e   :  { %2705 = vpow2.f32 %v2408_v33  ;;  %v746_v39 = vrot.slane %v697_v2, %v3051_v45  ;;  %v696_v46 = vcombine.high %v680_v5, %v680_v5  ;;  %v750_v43 = vrot.slane %v680_v5, %v3051_v45 }
 0x16f   :  { %2707 = vpow2.f32 %v2409_v36  ;;  %v800_v37 = vadd.f32 %v3272_v13, %v762_v63 }
 0x170   :  { %2709 = vpow2.f32 %v2411_v53  ;;  %v796_v53 = vadd.f32 %v3272_v13, %v746_v39  ;;  %v758_v7 = vrot.slane %v696_v46, %v3051_v45 }
 0x171   :  { %2711 = vpow2.f32 %v2413_v62 }
 0x172   :  { %v869_v51 = vpop.permute.xlu0 %868 }
 0x173   :  { %v829_v61 = vpop.permute.xlu1 %828  ;;  %v898_v24 = vmul.f32 %v3256_v59, %v869_v51 }
 0x174   :  { %v890_v1 = vmul.f32 %v3256_v59, %v829_v61 }
 0x175   :  { %v2700_v52 = vpop.eup %2699  ;;  %v914_v58 = vadd.f32 %v898_v24, %v798_v44 }
 0x176   :  { %v2702_v11 = vpop.eup %2701  ;;  %v906_v12 = vadd.f32 %v890_v1, %v790_v0  ;;  %v985_v18 = vadd.f32 1.0, %v2700_v52  ;;  %v879_v34 = vpop.permute.xlu0 %878  ;;  %v797_v52 = vadd.f32 %v3272_v13, %v750_v43 }
 0x177   :  { %v2704_v60 = vpop.eup %2703  ;;  %v839_v19 = vpop.permute.xlu1 %838  ;;  %v986_v20 = vadd.f32 1.0, %v2702_v11  ;;  %v900_v32 = vmul.f32 %v3256_v59, %v879_v34  ;;  %v3359_v48 = vadd.f32 %v3277_v57, %v914_v58 }
 0x178   :  { %v2706_v42 = vpop.eup %2705  ;;  %v3343_v56 = vadd.f32 %v3277_v57, %v906_v12  ;;  %v892_v21 = vmul.f32 %v3256_v59, %v839_v19  ;;  %2713 = vrcp.f32 %v985_v18  ;;  %v987_v22 = vadd.f32 1.0, %v2704_v60 }
 0x179   :  { %v2708_v6 = vpop.eup %2707  ;;  %2715 = vrcp.f32 %v986_v20  ;;  %v988_v54 = vadd.f32 1.0, %v2706_v42  ;;  %v916_v49 = vadd.f32 %v900_v32, %v800_v37  ;;  %v2418_v5 = vmul.f32 -1.442695, %v3359_v48 }
 0x17a   :  { %v2410_v4 = vmul.f32 -1.442695, %v3343_v56  ;;  %v908_v26 = vadd.f32 %v892_v21, %v792_v17  ;;  %2717 = vrcp.f32 %v987_v22  ;;  %v989_v29 = vadd.f32 1.0, %v2708_v6  ;;  %v2710_v51 = vpop.eup %2709 }
 0x17b   :  { %v849_v14 = vpop.permute.xlu1 %848  ;;  %2719 = vpow2.f32 %v2415_v15  ;;  %v2712_v62 = vpop.eup %2711  ;;  %v3372_v10 = vadd.f32 %v3277_v57, %v916_v49  ;;  %v991_v17 = vadd.f32 1.0, %v2710_v51 }
 0x17c   :  { %2721 = vpow2.f32 %v2410_v4  ;;  %v3351_v33 = vadd.f32 %v3277_v57, %v908_v26  ;;  %v894_v36 = vmul.f32 %v3256_v59, %v849_v14 }
 0x17d   :  { %2723 = vrcp.f32 %v988_v54  ;;  %v2420_v44 = vmul.f32 -1.442695, %v3372_v10 }
 0x17e   :  { %v2412_v40 = vmul.f32 -1.442695, %v3351_v33  ;;  %v910_v41 = vadd.f32 %v894_v36, %v794_v35  ;;  %2725 = vrcp.f32 %v989_v29 }
 0x17f   :  { %v859_v50 = vpop.permute.xlu1 %858 }
 0x180   :  { %2727 = vpow2.f32 %v2412_v40  ;;  %v3363_v23 = vadd.f32 %v3277_v57, %v910_v41  ;;  %v896_v61 = vmul.f32 %v3256_v59, %v859_v50 }
 0x182   :  { %v2714_v0 = vpop.eup %2713  ;;  %v2414_v1 = vmul.f32 -1.442695, %v3363_v23  ;;  %v912_v3 = vadd.f32 %v896_v61, %v796_v53 }
 0x183   :  { %v2716_v9 = vpop.eup %2715  ;;  %v864_v11 = vpop.permute.xlu1 %863  ;;  %v1033_v12 = vmul.f32 %v2714_v0, %v3288_v25  ;;  %v799_v25 = vadd.f32 %v3272_v13, %v758_v7 }
 0x184   :  { %v2718_v18 = vpop.eup %2717  ;;  %2729 = vpow2.f32 %v2414_v1  ;;  %v3376_v60 = vadd.f32 %v3277_v57, %v912_v3  ;;  %v897_v24 = vmul.f32 %v3256_v59, %v864_v11  ;;  %v1034_v19 = vmul.f32 %v2716_v9, %v3294_v8 }
 0x185   :  { %v2720_v20 = vpop.eup %2719  ;;  %2563 = vmatprep.mubr.msk.f32.mxu1 %vm517_vm0, %v1033_v12  ;;  %v1035_v15 = vmul.f32 %v2718_v18, %v3297_v27  ;;  %2731 = vpow2.f32 %v2418_v5  ;;  %v993_v8 = vadd.f32 1.0, %v2712_v62 }
 0x186   :  { %v2722_v42 = vpop.eup %2721  ;;  %v2416_v34 = vmul.f32 -1.442695, %v3376_v60  ;;  %v913_v21 = vadd.f32 %v897_v24, %v797_v52  ;;  %2564 = vmatmul.mubr.msk.f32.vlgmr.msra.gmra.mrb[0].mxu1 %vm517_vm0, %v1034_v19  ;;  %2733 = vrcp.f32 %v991_v17  ;;  %v995_v14 = vadd.f32 1.0, %v2720_v20  ;;  %v146_v20 = vld [vmem:[%s3659_s3 + $0x70] sm:$0xff] }
 0x187   :  { %v2724_v22 = vpop.eup %2723  ;;  %v990_v6 = vadd.f32 1.0, %v2722_v42  ;;  %v874_v2 = vpop.permute.xlu1 %873  ;;  %2566 = vmatprep.mubr.msk.f32.mxu1 %vm517_vm0, %v1035_v15  ;;  %v147_v15 = vld [vmem:[%s3659_s3 + $0x78] sm:$0xff] }
 0x188   :  { %v2726_v54 = vpop.eup %2725  ;;  %v3388_v27 = vadd.f32 %v3277_v57, %v913_v21  ;;  %v899_v4 = vmul.f32 %v3256_v59, %v874_v2  ;;  %v1036_v26 = vmul.f32 %v2724_v22, %v3300_v28  ;;  %v2656_v42 = vpack.c.bf16 %v147_v15, %v146_v20 }
 0x189   :  { %2735 = vrcp.f32 %v990_v6  ;;  %v1037_v13 = vmul.f32 %v2726_v54, %v3306_v30 }
 0x18a   :  { %v2728_v29 = vpop.eup %2727  ;;  %2737 = vpow2.f32 %v2416_v34  ;;  %v2417_v58 = vmul.f32 -1.442695, %v3388_v27  ;;  %v915_v63 = vadd.f32 %v899_v4, %v799_v25  ;;  %2567 = vmatmul.mubr.msk.f32.gmra.mrb[2].mxu1 %vm517_vm0, %v1036_v26  ;;  %v141_v34 = vld [vmem:[%s3659_s3 + $0x48] sm:$0xff]  ;;  %v3442_v25 = vld [vmem:[%s3659_s3 + $0xc2] ss:$0 sm:$0xff] }
 0x18b   :  { %2739 = vpow2.f32 %v2420_v44  ;;  %v992_v32 = vadd.f32 1.0, %v2728_v29  ;;  %2569 = vmatprep.mubr.msk.f32.mxu1 %vm517_vm0, %v1037_v13 }
 0x18c   :  { %v935_v59 = vadd.f32 %v3277_v57, %v915_v63  ;;  %2741 = vrcp.f32 %v993_v8 }
 0x18d   :  { %2743 = vrcp.f32 %v992_v32 }
 0x18e   :  { %v2730_v28 = vpop.eup %2729  ;;  %2745 = vpow2.f32 %v2417_v58  ;;  %v2419_v35 = vmul.f32 -1.442695, %v935_v59 }
 0x18f   :  { %v994_v30 = vadd.f32 1.0, %v2730_v28  ;;  %2747 = vrcp.f32 %v995_v14  ;;  %v2732_v36 = vpop.eup %2731 }
 0x190   :  { %2749 = vpow2.f32 %v2419_v35  ;;  %v2734_v37 = vpop.eup %2733  ;;  %v998_v43 = vadd.f32 1.0, %v2732_v36 }
 0x191   :  { %2751 = vrcp.f32 %v994_v30  ;;  %v1039_v50 = vmul.f32 %v2734_v37, %v3319_v31 }
 0x193   :  { %v2736_v39 = vpop.eup %2735 }
 0x194   :  { %v2738_v40 = vpop.eup %2737  ;;  %v1038_v41 = vmul.f32 %v2736_v39, %v3343_v56 }
 0x195   :  { %v2740_v46 = vpop.eup %2739  ;;  %v996_v49 = vadd.f32 1.0, %v2738_v40 }
 0x196   :  { %v2742_v57 = vpop.eup %2741  ;;  %2570 = vmatmul.mubr.msk.f32.gmra.mrb[4].mxu1 %vm517_vm0, %v1038_v41  ;;  %v1000_v3 = vadd.f32 1.0, %v2740_v46 }
 0x197   :  { %v2744_v51 = vpop.eup %2743  ;;  %2753 = vrcp.f32 %v996_v49  ;;  %2572 = vmatprep.mubr.msk.f32.mxu1 %vm517_vm0, %v1039_v50  ;;  %v1041_v1 = vmul.f32 %v2742_v57, %v3322_v47 }
 0x198   :  { %v2746_v53 = vpop.eup %2745  ;;  %v1040_v61 = vmul.f32 %v2744_v51, %v3351_v33  ;;  %2755 = vrcp.f32 %v998_v43 }
 0x199   :  { %v2748_v62 = vpop.eup %2747  ;;  %v997_v0 = vadd.f32 1.0, %v2746_v53 }
 0x19a   :  { %v2750_v56 = vpop.eup %2749  ;;  %2573 = vmatmul.mubr.msk.f32.gmra.mrb[6].mxu1 %vm517_vm0, %v1040_v61  ;;  %v1043_v9 = vmul.f32 %v2748_v62, %v3330_v55 }
 0x19b   :  { %v2752_v31 = vpop.eup %2751  ;;  %2757 = vrcp.f32 %v997_v0  ;;  %v999_v52 = vadd.f32 1.0, %v2750_v56  ;;  %2575 = vmatprep.mubr.msk.f32.mxu1 %vm517_vm0, %v1041_v1 }
 0x19c   :  { %v1042_v7 = vmul.f32 %v2752_v31, %v3363_v23 }
 0x19d   :  { %2759 = vrcp.f32 %v999_v52 }
 0x19e   :  { %2761 = vrcp.f32 %v1000_v3  ;;  %2576 = vmatmul.mubr.msk.f32.gmra.mrb[8].mxu1 %vm517_vm0, %v1042_v7 }
 0x19f   :  { %2578 = vmatprep.mubr.msk.f32.mxu1 %vm517_vm0, %v1043_v9 }
 0x1a1   :  { %v2754_v47 = vpop.eup %2753 }
 0x1a2   :  { %v1044_v33 = vmul.f32 %v2754_v47, %v3376_v60  ;;  %v2756_v5 = vpop.eup %2755  ;;  %v144_v60 = vld [vmem:[%s3659_s3 + $0x60] sm:$0xff]  ;;  %v3472_v47 = vpop.permute.xlu1 %1360 }
 0x1a3   :  { %v1046_v23 = vmul.f32 %v2756_v5, %v3359_v48  ;;  %v145_v48 = vld [vmem:[%s3659_s3 + $0x68] sm:$0xff] }
 0x1a4   :  { %2579 = vmatmul.mubr.msk.f32.gmra.mrb[10].mxu1 %vm517_vm0, %v1044_v33  ;;  %v2652_v19 = vpack.c.bf16 %v145_v48, %v144_v60 }
 0x1a5   :  { %v2758_v11 = vpop.eup %2757 }
 0x1a6   :  { %v1045_v12 = vmul.f32 %v2758_v11, %v3388_v27  ;;  %2653 = vmatprep.subr.bf16.mxu0 %v2652_v19 }
 0x1a7   :  { %v2760_v17 = vpop.eup %2759  ;;  %2655 = vmatpush3.bf16.msra.mxu0 %v2652_v19 }
 0x1a8   :  { %v2762_v18 = vpop.eup %2761  ;;  %v1047_v24 = vmul.f32 %v2760_v17, %v935_v59  ;;  %2581 = vmatprep.mubr.msk.f32.mxu1 %vm517_vm0, %v1045_v12  ;;  %2657 = vmatprep.subr.bf16.mxu0 %v2656_v42 }
 0x1a9   :  { %2582 = vmatmul.mubr.msk.f32.gmra.mrb[12].mxu1 %vm517_vm0, %v1046_v23  ;;  %v1048_v55 = vmul.f32 %v2762_v18, %v3372_v10  ;;  %v140_v10 = vld [vmem:[%s3659_s3 + $0x40] sm:$0xff] }
 0x1aa   :  { %2584 = vmatprep.mubr.msk.f32.mxu1 %vm517_vm0, %v1047_v24  ;;  %v3436_v21 = vpack.c.bf16 %v141_v34, %v140_v10 }
 0x1ab   :  { %2659 = vmatpush3.bf16.msra.mxu0 %v2656_v42 }
 0x1ac   :  { %2661 = vmatprep.subr.bf16.mxu0 %v3436_v21 }
 0x1ad   :  { %2585 = vmatmul.mubr.msk.f32.gmra.mrb[14].mxu1 %vm517_vm0, %v1048_v55 }
 0x259   :  { %v2565_v22 = vpop.f32.mrb[0].mxu1 }
 0x25a   :  { %v1173_v6 = vadd.f32 %v2565_v22, %v3442_v25  ;;  %v1167_v44 = vpop.f32.mrb[1].mxu1 }
 0x25b   :  { %v1168_v2 = vadd.f32 %v3442_v25, %v1167_v44 }
 0x25c   :  { %v2439_v8 = vmul.f32 -1.442695, %v1173_v6 }
 0x25d   :  { %v2438_v54 = vmul.f32 -1.442695, %v1168_v2  ;;  %v2568_v27 = vpop.f32.mrb[2].mxu1 }
 0x25e   :  { %2763 = vpow2.f32 %v2439_v8  ;;  %v1183_v4 = vadd.f32 %v2568_v27, %v3442_v25  ;;  %v1177_v26 = vpop.f32.mrb[3].mxu1 }
 0x25f   :  { %2765 = vpow2.f32 %v2438_v54  ;;  %v1178_v13 = vadd.f32 %v3442_v25, %v1177_v26 }
 0x260   :  { %v2441_v29 = vmul.f32 -1.442695, %v1183_v4 }
 0x261   :  { %v2440_v58 = vmul.f32 -1.442695, %v1178_v13 }
 0x262   :  { %2767 = vpow2.f32 %v2441_v29 }
 0x263   :  { %2769 = vpow2.f32 %v2440_v58 }
 0x268   :  { %v2764_v63 = vpop.eup %2763 }
 0x269   :  { %v2766_v32 = vpop.eup %2765  ;;  %v1295_v14 = vadd.f32 1.0, %v2764_v63  ;;  %v2571_v59 = vpop.f32.mrb[4].mxu1 }
 0x26a   :  { %v1294_v28 = vadd.f32 1.0, %v2766_v32  ;;  %v3449_v35 = vadd.f32 %v2571_v59, %v3442_v25  ;;  %v1187_v30 = vpop.f32.mrb[5].mxu1 }
 0x26b   :  { %2771 = vrcp.f32 %v1295_v14  ;;  %v3452_v36 = vadd.f32 %v3442_v25, %v1187_v30 }
 0x26c   :  { %v2768_v37 = vpop.eup %2767  ;;  %2773 = vrcp.f32 %v1294_v28  ;;  %v2443_v39 = vmul.f32 -1.442695, %v3449_v35 }
 0x26d   :  { %v2770_v40 = vpop.eup %2769  ;;  %v1297_v41 = vadd.f32 1.0, %v2768_v37  ;;  %v2442_v46 = vmul.f32 -1.442695, %v3452_v36  ;;  %v2574_v49 = vpop.f32.mrb[6].mxu1 }
 0x26e   :  { %v1296_v50 = vadd.f32 1.0, %v2770_v40  ;;  %2775 = vpow2.f32 %v2443_v39  ;;  %v3457_v57 = vadd.f32 %v2574_v49, %v3442_v25  ;;  %v1197_v43 = vpop.f32.mrb[7].mxu1 }
 0x26f   :  { %2777 = vrcp.f32 %v1297_v41  ;;  %v3460_v51 = vadd.f32 %v3442_v25, %v1197_v43 }
 0x270   :  { %2779 = vrcp.f32 %v1296_v50  ;;  %v2445_v53 = vmul.f32 -1.442695, %v3457_v57 }
 0x271   :  { %2781 = vpow2.f32 %v2442_v46  ;;  %v2444_v61 = vmul.f32 -1.442695, %v3460_v51  ;;  %v2577_v62 = vpop.f32.mrb[8].mxu1 }
 0x272   :  { %2783 = vpow2.f32 %v2445_v53  ;;  %v3465_v0 = vadd.f32 %v2577_v62, %v3442_v25  ;;  %v1207_v1 = vpop.f32.mrb[9].mxu1 }
 0x273   :  { %2785 = vpow2.f32 %v2444_v61  ;;  %v3468_v56 = vadd.f32 %v3442_v25, %v1207_v1 }
 0x274   :  { %v2447_v3 = vmul.f32 -1.442695, %v3465_v0 }
 0x275   :  { %v2772_v31 = vpop.eup %2771  ;;  %v2446_v52 = vmul.f32 -1.442695, %v3468_v56 }
 0x276   :  { %v2774_v7 = vpop.eup %2773  ;;  %v1343_v9 = vmul.f32 %v2772_v31, %v1173_v6  ;;  %2787 = vpow2.f32 %v2447_v3 }
 0x277   :  { %v1342_v33 = vmul.f32 %v2774_v7, %v1168_v2  ;;  %2789 = vpow2.f32 %v2446_v52  ;;  %v2580_v5 = vpop.f32.mrb[10].mxu1 }
 0x278   :  { %v2776_v11 = vpop.eup %2775  ;;  %v1369_v12 = vmul.f32 %v3472_v47, %v1343_v9  ;;  %v3476_v17 = vadd.f32 %v2580_v5, %v3442_v25  ;;  %v1217_v23 = vpop.f32.mrb[11].mxu1 }
 0x279   :  { %v2778_v18 = vpop.eup %2777  ;;  %v1368_v24 = vmul.f32 %v3472_v47, %v1342_v33  ;;  %v1299_v55 = vadd.f32 1.0, %v2776_v11  ;;  %v3480_v60 = vadd.f32 %v3442_v25, %v1217_v23 }
 0x27a   :  { %v2780_v48 = vpop.eup %2779  ;;  %v1391_v19 = vsel %vm517_vm0, %v1369_v12, 0.0  ;;  %v1345_v20 = vmul.f32 %v2778_v18, %v1183_v4  ;;  %v2449_v15 = vmul.f32 -1.442695, %v3476_v17 }
 0x27b   :  { %v2782_v10 = vpop.eup %2781  ;;  %v1392_v42 = vrot.slane %v1391_v19, 4  ;;  %v1384_v34 = vsel %vm517_vm0, %v1368_v24, 0.0  ;;  %v1344_v22 = vmul.f32 %v2780_v48, %v1178_v13  ;;  %2791 = vrcp.f32 %v1299_v55 }
 0x27c   :  { %v2784_v6 = vpop.eup %2783  ;;  %v1385_v44 = vrot.slane %v1384_v34, 4  ;;  %v1371_v2 = vmul.f32 %v3472_v47, %v1345_v20  ;;  %v1298_v8 = vadd.f32 1.0, %v2782_v10  ;;  %2793 = vpow2.f32 %v2449_v15  ;;  %v2583_v54 = vpop.f32.mrb[12].mxu1 }
 0x27d   :  { %v2786_v27 = vpop.eup %2785  ;;  %v1393_v26 = vadd.f32 %v1392_v42, %v1391_v19  ;;  %v1370_v4 = vmul.f32 %v3472_v47, %v1344_v22  ;;  %v1301_v29 = vadd.f32 1.0, %v2784_v6  ;;  %v2448_v58 = vmul.f32 -1.442695, %v3480_v60  ;;  %v1227_v63 = vpop.f32.mrb[13].mxu1 }
 0x27e   :  { %v1386_v32 = vadd.f32 %v1385_v44, %v1384_v34  ;;  %v1405_v13 = vsel %vm517_vm0, %v1371_v2, 0.0  ;;  %2795 = vrcp.f32 %v1298_v8  ;;  %v1300_v14 = vadd.f32 1.0, %v2786_v27 }
 0x27f   :  { %v1394_v59 = vrot.slane %v1393_v26, 2  ;;  %v1406_v28 = vrot.slane %v1405_v13, 4  ;;  %v1398_v30 = vsel %vm517_vm0, %v1370_v4, 0.0  ;;  %2797 = vrcp.f32 %v1301_v29 }
 0x280   :  { %v2788_v37 = vpop.eup %2787  ;;  %v1387_v39 = vrot.slane %v1386_v32, 2  ;;  %v1399_v40 = vrot.slane %v1398_v30, 4  ;;  %2799 = vrcp.f32 %v1300_v14  ;;  %v3491_v41 = vadd.f32 %v2583_v54, %v3442_v25  ;;  %v2586_v46 = vpop.f32.mrb[14].mxu1 }
 0x281   :  { %v2790_v49 = vpop.eup %2789  ;;  %v1395_v50 = vadd.f32 %v1394_v59, %v1393_v26  ;;  %v1407_v43 = vadd.f32 %v1406_v28, %v1405_v13  ;;  %v1303_v53 = vadd.f32 1.0, %v2788_v37  ;;  %2801 = vpow2.f32 %v2448_v58  ;;  %v1237_v61 = vpop.f32.mrb[15].mxu1 }
 0x282   :  { %v1388_v62 = vadd.f32 %v1387_v39, %v1386_v32  ;;  %v1400_v1 = vadd.f32 %v1399_v40, %v1398_v30  ;;  %v1302_v3 = vadd.f32 1.0, %v2790_v49  ;;  %v2451_v31 = vmul.f32 -1.442695, %v3491_v41 }
 0x283   :  { %v1396_v52 = vrot.slane %v1395_v50, 1  ;;  %v1408_v7 = vrot.slane %v1407_v43, 2  ;;  %2803 = vrcp.f32 %v1303_v53  ;;  %v3495_v9 = vadd.f32 %v3442_v25, %v1227_v63 }
 0x284   :  { %v1389_v33 = vrot.slane %v1388_v62, 1  ;;  %v1401_v5 = vrot.slane %v1400_v1, 2  ;;  %2805 = vrcp.f32 %v1302_v3  ;;  %v3498_v11 = vadd.f32 %v2586_v46, %v3442_v25 }
 0x285   :  { %v2792_v12 = vpop.eup %2791  ;;  %v1397_v23 = vadd.f32 %v1396_v52, %v1395_v50  ;;  %v1409_v18 = vadd.f32 %v1408_v7, %v1407_v43  ;;  %2807 = vpow2.f32 %v2451_v31  ;;  %v2450_v24 = vmul.f32 -1.442695, %v3495_v9  ;;  %v3523_v43 = vpop.permute.xlu0 %1365 }
 0x286   :  { %v2794_v55 = vpop.eup %2793  ;;  %v1390_v48 = vadd.f32 %v1389_v33, %v1388_v62  ;;  %v1402_v19 = vadd.f32 %v1401_v5, %v1400_v1  ;;  %v1347_v20 = vmul.f32 %v2792_v12, %v3449_v35  ;;  %v2453_v15 = vmul.f32 -1.442695, %v3498_v11 }
 0x287   :  { %v1410_v10 = vrot.slane %v1409_v18, 1  ;;  %v1305_v42 = vadd.f32 1.0, %v2794_v55  ;;  %2809 = vpow2.f32 %v2450_v24  ;;  %v3504_v34 = vadd.f32 %v3442_v25, %v1237_v61 }
 0x288   :  { %v2796_v22 = vpop.eup %2795  ;;  %v1513_v6 = vsel %vm1512_vm2, %v1397_v23, %v1390_v48  ;;  %v1403_v44 = vrot.slane %v1402_v19, 1  ;;  %v1373_v2 = vmul.f32 %v3472_v47, %v1347_v20  ;;  %2811 = vpow2.f32 %v2453_v15 }
 0x289   :  { %v2798_v8 = vpop.eup %2797  ;;  %v1346_v54 = vmul.f32 %v2796_v22, %v3452_v36  ;;  %2813 = vrcp.f32 %v1305_v42  ;;  %v2452_v35 = vmul.f32 -1.442695, %v3504_v34  ;;  %v1411_v26 = vadd.f32 %v1410_v10, %v1409_v18 }
 0x28a   :  { %v2800_v27 = vpop.eup %2799  ;;  %v1404_v4 = vadd.f32 %v1403_v44, %v1402_v19  ;;  %v1419_v25 = vsel %vm517_vm0, %v1373_v2, 0.0  ;;  %v1349_v29 = vmul.f32 %v2798_v8, %v3457_v57 }
 0x28b   :  { %v2802_v58 = vpop.eup %2801  ;;  %v1420_v63 = vrot.slane %v1419_v25, 4  ;;  %v1372_v32 = vmul.f32 %v3472_v47, %v1346_v54  ;;  %v1348_v13 = vmul.f32 %v2800_v27, %v3460_v51  ;;  %2815 = vpow2.f32 %v2452_v35 }
 0x28c   :  { %v1375_v36 = vmul.f32 %v3472_v47, %v1349_v29  ;;  %v1304_v14 = vadd.f32 1.0, %v2802_v58  ;;  %v1515_v59 = vsel %vm1514_vm3, %v1404_v4, %v1513_v6 }
 0x28d   :  { %v2804_v28 = vpop.eup %2803  ;;  %v1421_v30 = vadd.f32 %v1420_v63, %v1419_v25  ;;  %v1412_v37 = vsel %vm517_vm0, %v1372_v32, 0.0  ;;  %v1374_v39 = vmul.f32 %v3472_v47, %v1348_v13  ;;  %v3519_v57 = vsel %vm1516_vm4, %v1411_v26, %v1515_v59 }
 0x28e   :  { %v2806_v40 = vpop.eup %2805  ;;  %v1413_v46 = vrot.slane %v1412_v37, 4  ;;  %v1433_v49 = vsel %vm517_vm0, %v1375_v36, 0.0  ;;  %v1351_v51 = vmul.f32 %v2804_v28, %v3465_v0  ;;  %2817 = vrcp.f32 %v1304_v14 }
 0x28f   :  { %v2808_v50 = vpop.eup %2807  ;;  %v1422_v53 = vrot.slane %v1421_v30, 2  ;;  %v1434_v61 = vrot.slane %v1433_v49, 4  ;;  %v1426_v62 = vsel %vm517_vm0, %v1374_v39, 0.0  ;;  %v1350_v1 = vmul.f32 %v2806_v40, %v3468_v56 }
 0x290   :  { %v1414_v3 = vadd.f32 %v1413_v46, %v1412_v37  ;;  %v1427_v31 = vrot.slane %v1426_v62, 4  ;;  %v1377_v52 = vmul.f32 %v3523_v43, %v1351_v51  ;;  %v1307_v7 = vadd.f32 1.0, %v2808_v50 }
 0x291   :  { %v2810_v33 = vpop.eup %2809  ;;  %v1423_v5 = vadd.f32 %v1422_v53, %v1421_v30  ;;  %v1435_v12 = vadd.f32 %v1434_v61, %v1433_v49  ;;  %v1376_v0 = vmul.f32 %v3523_v43, %v1350_v1 }
 0x292   :  { %v2812_v23 = vpop.eup %2811  ;;  %v1415_v18 = vrot.slane %v1414_v3, 2  ;;  %v1428_v24 = vadd.f32 %v1427_v31, %v1426_v62  ;;  %v1447_v55 = vsel %vm517_vm0, %v1377_v52, 0.0  ;;  %2819 = vrcp.f32 %v1307_v7 }
 0x293   :  { %v2814_v48 = vpop.eup %2813  ;;  %v1424_v56 = vrot.slane %v1423_v5, 1  ;;  %v1436_v19 = vrot.slane %v1435_v12, 2  ;;  %v1448_v20 = vrot.slane %v1447_v55, 4  ;;  %v1440_v15 = vsel %vm517_vm0, %v1376_v0, 0.0 }
 0x294   :  { %v1416_v10 = vadd.f32 %v1415_v18, %v1414_v3  ;;  %v1429_v42 = vrot.slane %v1428_v24, 2  ;;  %v1441_v22 = vrot.slane %v1440_v15, 4  ;;  %v1353_v6 = vmul.f32 %v2814_v48, %v3476_v17 }
 0x295   :  { %v2816_v44 = vpop.eup %2815  ;;  %v1425_v2 = vadd.f32 %v1424_v56, %v1423_v5  ;;  %v1437_v8 = vadd.f32 %v1436_v19, %v1435_v12  ;;  %v1449_v54 = vadd.f32 %v1448_v20, %v1447_v55  ;;  %v1306_v35 = vadd.f32 1.0, %v2810_v33 }
 0x296   :  { %v1417_v27 = vrot.slane %v1416_v10, 1  ;;  %v1430_v26 = vadd.f32 %v1429_v42, %v1428_v24  ;;  %v1442_v4 = vadd.f32 %v1441_v22, %v1440_v15  ;;  %v1379_v25 = vmul.f32 %v3523_v43, %v1353_v6 }
 0x297   :  { %v1450_v29 = vrot.slane %v1449_v54, 2  ;;  %2821 = vrcp.f32 %v1306_v35  ;;  %v1309_v58 = vadd.f32 1.0, %v2812_v23  ;;  %v1308_v63 = vadd.f32 1.0, %v2816_v44 }
 0x298   :  { %v2818_v32 = vpop.eup %2817  ;;  %v1418_v13 = vadd.f32 %v1417_v27, %v1416_v10  ;;  %v1431_v36 = vrot.slane %v1430_v26, 1  ;;  %v1443_v14 = vrot.slane %v1442_v4, 2  ;;  %v1461_v17 = vsel %vm517_vm0, %v1379_v25, 0.0 }
 0x299   :  { %v1451_v59 = vadd.f32 %v1450_v29, %v1449_v54  ;;  %v1462_v28 = vrot.slane %v1461_v17, 4  ;;  %v1352_v30 = vmul.f32 %v2818_v32, %v3480_v60  ;;  %2823 = vrcp.f32 %v1309_v58 }
 0x29a   :  { %v1444_v37 = vadd.f32 %v1443_v14, %v1442_v4  ;;  %2825 = vrcp.f32 %v1308_v63  ;;  %v1432_v39 = vadd.f32 %v1431_v36, %v1430_v26  ;;  %v1438_v40 = vrot.slane %v1437_v8, 1 }
 0x29b   :  { %v1452_v46 = vrot.slane %v1451_v59, 1  ;;  %v1463_v49 = vadd.f32 %v1462_v28, %v1461_v17  ;;  %v1378_v51 = vmul.f32 %v3523_v43, %v1352_v30  ;;  %v1519_v50 = vsel %vm1518_vm5, %v1418_v13, %v3519_v57 }
 0x29c   :  { %v2820_v53 = vpop.eup %2819  ;;  %v1445_v61 = vrot.slane %v1444_v37, 1  ;;  %v1439_v62 = vadd.f32 %v1438_v40, %v1437_v8  ;;  %v1521_v1 = vsel %vm1520_vm6, %v1425_v2, %v1519_v50 }
 0x29d   :  { %v1453_v3 = vadd.f32 %v1452_v46, %v1451_v59  ;;  %v1464_v60 = vrot.slane %v1463_v49, 2  ;;  %v1454_v31 = vsel %vm517_vm0, %v1378_v51, 0.0  ;;  %v1355_v52 = vmul.f32 %v2820_v53, %v3491_v41 }
 0x29e   :  { %v1446_v7 = vadd.f32 %v1445_v61, %v1444_v37  ;;  %v1455_v33 = vrot.slane %v1454_v31, 4  ;;  %v1523_v5 = vsel %vm1522_vm7, %v1432_v39, %v1521_v1  ;;  %v143_v1 = vld [vmem:[%s3659_s3 + $0x58] sm:$0xff] }
 0x29f   :  { %v1381_v12 = vmul.f32 %v3523_v43, %v1355_v52  ;;  %v1525_v57 = vsel %vm1524_vm8, %v1439_v62, %v1523_v5  ;;  %v1465_v24 = vadd.f32 %v1464_v60, %v1463_v49  ;;  %v142_v62 = vld [vmem:[%s3659_s3 + $0x50] sm:$0xff]  ;;  %v2839_v5 = vld [vmem:[%s3656_s0] sm:$0xff] }
 0x2a0   :  { %v1526_v0 = vsel %vm1512_vm2, %v1453_v3, %v1446_v7  ;;  %v1456_v23 = vadd.f32 %v1455_v33, %v1454_v31  ;;  %2595 = vmatprep.mubr.msk.f32.mxu0 %vm517_vm0, %v1525_v57  ;;  %v2664_v7 = vpack.c.bf16 %v143_v1, %v142_v62  ;;  %v148_v57 = vld [vmem:[%s3659_s3 + $0x80] sm:$0xff] }
 0x2a1   :  { %v2822_v18 = vpop.eup %2821  ;;  %v1475_v55 = vsel %vm517_vm0, %v1381_v12, 0.0  ;;  %v1466_v6 = vrot.slane %v1465_v24, 1  ;;  %v2840_v12 = vld [vmem:[%s3656_s0 + $0x8] sm:$0xff] }
 0x2a2   :  { %v1457_v48 = vrot.slane %v1456_v23, 2  ;;  %v1476_v56 = vrot.slane %v1475_v55, 4  ;;  %v1354_v41 = vmul.f32 %v2822_v18, %v3495_v9  ;;  %v151_v18 = vld [vmem:[%s3659_s3 + $0x98] sm:$0xff] }
 0x2a3   :  { %v2824_v19 = vpop.eup %2823  ;;  %v1467_v25 = vadd.f32 %v1466_v6, %v1465_v24 }
 0x2a4   :  { %v2826_v20 = vpop.eup %2825  ;;  %v1458_v15 = vadd.f32 %v1457_v48, %v1456_v23  ;;  %v1477_v10 = vadd.f32 %v1476_v56, %v1475_v55  ;;  %v1380_v42 = vmul.f32 %v3523_v43, %v1354_v41  ;;  %v1357_v22 = vmul.f32 %v2824_v19, %v3498_v11  ;;  %v150_v23 = vld [vmem:[%s3659_s3 + $0x90] sm:$0xff]  ;;  %v152_v55 = vld [vmem:[%s3659_s3 + $0xa0] sm:$0xff]  ;;  %v153_v48 = vld [vmem:[%s3659_s3 + $0xa8] sm:$0xff] }
 0x2a5   :  { %v1356_v44 = vmul.f32 %v2826_v20, %v3504_v34  ;;  %v2672_v24 = vpack.c.bf16 %v151_v18, %v150_v23  ;;  %v2676_v56 = vpack.c.bf16 %v153_v48, %v152_v55  ;;  %v154_v41 = vld [vmem:[%s3659_s3 + $0xb0] sm:$0xff]  ;;  %v155_v19 = vld [vmem:[%s3659_s3 + $0xb8] sm:$0xff] }
 0x2a6   :  { %v1459_v2 = vrot.slane %v1458_v15, 1  ;;  %v1478_v8 = vrot.slane %v1477_v10, 2  ;;  %v1468_v54 = vsel %vm517_vm0, %v1380_v42, 0.0  ;;  %v1383_v35 = vmul.f32 %v3523_v43, %v1357_v22 }
 0x2a7   :  { %v1469_v27 = vrot.slane %v1468_v54, 4  ;;  %v1382_v9 = vmul.f32 %v3523_v43, %v1356_v44  ;;  %v2680_v20 = vpack.c.bf16 %v155_v19, %v154_v41 }
 0x2a8   :  { %v1460_v26 = vadd.f32 %v1459_v2, %v1458_v15  ;;  %v1489_v4 = vsel %vm517_vm0, %v1383_v35, 0.0  ;;  %v1479_v34 = vadd.f32 %v1478_v8, %v1477_v10  ;;  %v2458_v15 = vld [vmem:[%s3659_s3 + $0xc3] ss:$0 sm:$0xff] }
 0x2a9   :  { %v1470_v29 = vadd.f32 %v1469_v27, %v1468_v54  ;;  %v1490_v58 = vrot.slane %v1489_v4, 4  ;;  %v1482_v11 = vsel %vm517_vm0, %v1382_v9, 0.0 }
 0x2aa   :  { %v1527_v63 = vsel %vm1514_vm3, %v1460_v26, %v1526_v0  ;;  %v1483_v32 = vrot.slane %v1482_v11, 4  ;;  %v1480_v30 = vrot.slane %v1479_v34, 1 }
 0x2ab   :  { %v1471_v13 = vrot.slane %v1470_v29, 2  ;;  %v1491_v36 = vadd.f32 %v1490_v58, %v1489_v4  ;;  %v1528_v14 = vsel %vm1516_vm4, %v1467_v25, %v1527_v63 }
 0x2ac   :  { %v1484_v17 = vadd.f32 %v1483_v32, %v1482_v11  ;;  %v1481_v50 = vadd.f32 %v1480_v30, %v1479_v34 }
 0x2ad   :  { %v1472_v59 = vadd.f32 %v1471_v13, %v1470_v29  ;;  %v1492_v28 = vrot.slane %v1491_v36, 2  ;;  %v2461_v29 = vld [vmem:[%s3659_s3 + $0xc4] ss:$0 sm:$0xff] }
 0x2ae   :  { %v1485_v37 = vrot.slane %v1484_v17, 2 }
 0x2af   :  { %v1473_v39 = vrot.slane %v1472_v59, 1  ;;  %v1493_v40 = vadd.f32 %v1492_v28, %v1491_v36 }
 0x2b0   :  { %v1486_v46 = vadd.f32 %v1485_v37, %v1484_v17 }
 0x2b1   :  { %v1474_v49 = vadd.f32 %v1473_v39, %v1472_v59  ;;  %v1494_v51 = vrot.slane %v1493_v40, 1  ;;  %v1831_v59 = vpop.permute.xlu1 %1830 }
 0x2b2   :  { %v1487_v53 = vrot.slane %v1486_v46, 1 }
 0x2b3   :  { %v1529_v61 = vsel %vm1518_vm5, %v1474_v49, %v1528_v14  ;;  %v1495_v31 = vadd.f32 %v1494_v51, %v1493_v40  ;;  %v1836_v14 = vpop.permute.xlu0 %1835 }
 0x2b4   :  { %v1488_v3 = vadd.f32 %v1487_v53, %v1486_v46  ;;  %v1530_v60 = vsel %vm1520_vm6, %v1481_v50, %v1529_v61 }
 0x2b6   :  { %v1531_v52 = vsel %vm1522_vm7, %v1488_v3, %v1530_v60 }
 0x2b7   :  { %v1532_v33 = vsel %vm1524_vm8, %v1495_v31, %v1531_v52 }
 0x2b8   :  { %2596 = vmatmul.mubr.msk.f32.vlgmr.msra.gmra.mrb[2].mxu0 %vm517_vm0, %v1532_v33 }
 0x2b9   :  { %2663 = vmatpush3.bf16.msra.mxu0 %v3436_v21  ;;  %2606 = vmatprep.mubr.msk.f32.mxu0 %vm517_vm0, %v2839_v5  ;;  %v149_v21 = vld [vmem:[%s3659_s3 + $0x88] sm:$0xff] }
 0x2ba   :  { %2665 = vmatprep.subr.bf16.mxu0 %v2664_v7  ;;  %v2668_v0 = vpack.c.bf16 %v149_v21, %v148_v57 }
 0x2bd   :  { %2667 = vmatpush3.bf16.msra.mxu0 %v2664_v7 }
 0x2be   :  { %2669 = vmatprep.subr.bf16.mxu0 %v2668_v0 }
 0x2c0   :  { %2607 = vmatmul.mubr.msk.f32.vlgmr.msra.gmra.mrb[2].mxu0 %vm517_vm0, %v2840_v12 }
 0x2c1   :  { %2671 = vmatpush3.bf16.msra.mxu0 %v2668_v0 }
 0x2c2   :  { %2673 = vmatprep.subr.bf16.mxu0 %v2672_v24 }
 0x2c5   :  { %2675 = vmatpush3.bf16.msra.mxu0 %v2672_v24 }
 0x2c6   :  { %2677 = vmatprep.subr.bf16.mxu0 %v2676_v56 }
 0x2c9   :  { %2679 = vmatpush3.bf16.msra.mxu0 %v2676_v56 }
 0x2ca   :  { %2681 = vmatprep.subr.bf16.mxu0 %v2680_v20 }
 0x2cd   :  { %2683 = vmatpush3.bf16.msra.mxu0 %v2680_v20 }
 0x393   :  { %v2608_v10 = vpop.f32.mrb[2].mxu0 }
 0x394   :  { %v1692_v42 = vadd.f32 %v2608_v10, %v2458_v15  ;;  %v1678_v22 = vpop.f32.mrb[3].mxu0 }
 0x395   :  { %v1691_v6 = vadd.f32 %v2458_v15, %v1678_v22 }
 0x396   :  { %v2460_v44 = vmul.f32 -1.442695, %v1692_v42 }
 0x397   :  { %v2459_v2 = vmul.f32 -1.442695, %v1691_v6 }
 0x398   :  { %2827 = vpow2.f32 %v2460_v44 }
 0x399   :  { %2829 = vpow2.f32 %v2459_v2 }
 0x3a2   :  { %v2828_v8 = vpop.eup %2827 }
 0x3a3   :  { %v2830_v54 = vpop.eup %2829  ;;  %v1700_v35 = vadd.f32 1.0, %v2828_v8 }
 0x3a4   :  { %v1699_v27 = vadd.f32 1.0, %v2830_v54 }
 0x3a5   :  { %2831 = vrcp.f32 %v1700_v35 }
 0x3a6   :  { %2833 = vrcp.f32 %v1699_v27 }
 0x3a7   :  { %2835 = vrcp.f32 %v1836_v14 }
 0x3a8   :  { %2837 = vrcp.f32 %v1831_v59 }
 0x3af   :  { %v2832_v9 = vpop.eup %2831 }
 0x3b0   :  { %v2834_v26 = vpop.eup %2833  ;;  %v1706_v25 = vmul.f32 %v2832_v9, %v1692_v42 }
 0x3b1   :  { %v1705_v4 = vmul.f32 %v2834_v26, %v1691_v6  ;;  %v2836_v1 = vpop.eup %2835 }
 0x3b2   :  { %v2838_v3 = vpop.eup %2837 }
 0x3b3   :  { %2625 = vmatprep.mubr.msk.f32.mxu0 %vm1711_vm9, %v1705_v4 }
 0x3b4   :  { %2626 = vmatmul.mubr.msk.f32.vlgmr.msra.gmra.mrb[4].mxu0 %vm1711_vm9, %v1706_v25 }
 0x487   :  { %v2627_v58 = vpop.f32.mrb[4].mxu0 }
 0x488   :  { %v1790_v11 = vadd.f32 %v2627_v58, %v2461_v29  ;;  %v1784_v63 = vpop.f32.mrb[5].mxu0 }
 0x489   :  { %v1785_v34 = vadd.f32 %v2461_v29, %v1784_v63 }
 0x48a   :  { %v1794_v32 = vadd.f32 %v2840_v12, %v1790_v11 }
 0x48b   :  { %v1793_v13 = vadd.f32 %v2839_v5, %v1785_v34 }
 0x48c   :  { %v1813_v36 = vmul.f32 %v1794_v32, %v3523_v43 }
 0x48d   :  { %v1812_v17 = vmul.f32 %v1793_v13, %v3472_v47 }
 0x48e   :  { %v1821_v28 = vsel %vm517_vm0, %v1813_v36, 0.0 }
 0x48f   :  { %v1822_v30 = vrot.slane %v1821_v28, 4  ;;  %v1814_v37 = vsel %vm517_vm0, %v1812_v17, 0.0 }
 0x490   :  { %v1815_v39 = vrot.slane %v1814_v37, 4 }
 0x491   :  { %v1823_v40 = vadd.f32 %v1822_v30, %v1821_v28 }
 0x492   :  { %v1816_v46 = vadd.f32 %v1815_v39, %v1814_v37 }
 0x493   :  { %v1824_v49 = vrot.slane %v1823_v40, 2 }
 0x494   :  { %v1817_v51 = vrot.slane %v1816_v46, 2 }
 0x495   :  { %v1825_v50 = vadd.f32 %v1824_v49, %v1823_v40 }
 0x496   :  { %v1818_v53 = vadd.f32 %v1817_v51, %v1816_v46 }
 0x497   :  { %v1826_v61 = vrot.slane %v1825_v50, 1 }
 0x498   :  { %v1819_v43 = vrot.slane %v1818_v53, 1 }
 0x499   :  { %v1827_v62 = vadd.f32 %v1826_v61, %v1825_v50 }
 0x49a   :  { %v1820_v47 = vadd.f32 %v1819_v43, %v1818_v53 }
 0x49b   :  { %v1841_v60 = vmul.f32 %v2836_v1, %v1827_v62 }
 0x49c   :  { %v1839_v31 = vmul.f32 %v2838_v3, %v1820_v47 }
 0x49d   :  { %2895 = dma.done.wait [#allocation3], 3520 }
 0x49e   :  { %2896 = vsyncadd [#allocation3], 4294963776  ;;  %2086 = vmatprep.mubr.bf16.mxu1 %v2902_v16  ;;  %2127 = vmatprep.mubr.bf16.mxu0 %v2902_v16  ;;  %v1887_v52 = vpack.c.bf16 %v1839_v31, %v1839_v31  ;;  %v1888_v7 = vpack.c.bf16 %v1841_v60, %v1841_v60  ;;  %v2841_v33 = vld [vmem:[#allocation2 + $0x4] ss:$44 sps:$4 sm:$0xff]   ;;  %v2843_v57 = vld [vmem:[#allocation2 + $0xc] ss:$44 sps:$4 sm:$0xff]  }
 0x49f   :  { %2054 = vmatprep.subr.bf16.mxu1 %v2841_v33  ;;  %v2845_v21 = vld [vmem:[#allocation2] ss:$44 sps:$4 sm:$0xff]   ;;  %v2846_v0 = vld [vmem:[#allocation2 + $0x8] ss:$44 sps:$4 sm:$0xff]   ;;  %2095 = vmatprep.subr.bf16.mxu0 %v2843_v57  ;;  %v2849_v18 = vld [vmem:[#allocation2 + $0x64] ss:$44 sps:$4 sm:$0xff]  }
 0x4a0   :  { %v1935_v5 = vunpack.c.l.b16 %v1887_v52  ;;  %v1936_v12 = vunpack.c.l.b16 %v1888_v7  ;;  %v2847_v23 = vld [vmem:[#allocation2 + $0x5c] ss:$44 sps:$4 sm:$0xff]   ;;  %2055 = vmatpush1.bf16.msra.mxu1 %v2845_v21  ;;  %2096 = vmatpush1.bf16.msra.mxu0 %v2846_v0  ;;  %v2851_v24 = vld [vmem:[#allocation2 + $0x58] ss:$44 sps:$4 sm:$0xff]   ;;  %v2852_v48 = vld [vmem:[#allocation2 + $0x60] ss:$44 sps:$4 sm:$0xff]  }
 0x4a1   :  { %2056 = vmatprep.subr.bf16.mxu1 %v2847_v23  ;;  %2097 = vmatprep.subr.bf16.mxu0 %v2849_v18  ;;  %v2855_v56 = vld [vmem:[#allocation2 + $0x14] ss:$44 sps:$4 sm:$0xff]   ;;  %v2853_v19 = vld [vmem:[#allocation2 + $0x10] ss:$44 sps:$4 sm:$0xff]   ;;  %v2856_v15 = vld [vmem:[#allocation2 + $0x18] ss:$44 sps:$4 sm:$0xff]  }
 0x4a2   :  { %v1937_v55 = vsel %vm1512_vm2, %v1936_v12, %v1935_v5  ;;  %v2858_v20 = vld [vmem:[#allocation2 + $0x1c] ss:$44 sps:$4 sm:$0xff]   ;;  %v2861_v10 = vld [vmem:[#allocation2 + $0x6c] ss:$44 sps:$4 sm:$0xff]   ;;  %v2864_v42 = vld [vmem:[#allocation2 + $0x74] ss:$44 sps:$4 sm:$0xff]  }
 0x4a3   :  { %v1938_v41 = vpack.c.b16 %v1937_v55, %v1937_v55  ;;  %v2859_v22 = vld [vmem:[#allocation2 + $0x68] ss:$44 sps:$4 sm:$0xff]   ;;  %v2862_v6 = vld [vmem:[#allocation2 + $0x70] ss:$44 sps:$4 sm:$0xff]   ;;  %v2865_v2 = vld [vmem:[#allocation2 + $0x20] ss:$44 sps:$4 sm:$0xff]  }
 0x4a4   :  { %2057 = vmatpush1.bf16.msra.mxu1 %v2851_v24  ;;  %2098 = vmatpush1.bf16.msra.mxu0 %v2852_v48  ;;  %v2867_v44 = vld [vmem:[#allocation2 + $0x24] ss:$44 sps:$4 sm:$0xff]   ;;  %v2868_v8 = vld [vmem:[#allocation2 + $0x28] ss:$44 sps:$4 sm:$0xff]   ;;  %v2904_v54 = vmov 0.0   ;;  %vm2905_vm10 = vmmov 0  }
 0x4a5   :  { %2136 = vmatprep.subr.bf16.mxu1 %v2855_v56  ;;  %2177 = vmatprep.subr.bf16.mxu0 %v2858_v20  ;;  %v2871_v35 = vld [vmem:[#allocation2 + $0x7c] ss:$44 sps:$4 sm:$0xff]   ;;  %v2869_v27 = vld [vmem:[#allocation2 + $0x78] ss:$44 sps:$4 sm:$0xff]   ;;  %v2872_v9 = vld [vmem:[#allocation2 + $0x80] ss:$44 sps:$4 sm:$0xff]  }
 0x4a6   :  { %v1870_v26 = vld [vmem:[#allocation2 + $0xb0] sm:$0x11]  ;;  %v1871_v4 = vld [vmem:[#allocation2 + $0xb8] sm:$0x11]  ;;  %v2906_v25 = vmov 1983009808  }
 0x4a7   :  { %2486 = vmatmul.mubr.msk.bf16.vlgmr.msra.gmra.mrb[16].mxu1 %vm517_vm0, %v1938_v41  ;;  %2487 = vmatmul.mubr.msk.bf16.vlgmr.msra.gmra.mrb[8].mxu0 %vm517_vm0, %v1938_v41  ;;  %v2313_v29 = vunpack.c.l.s4 %v2906_v25  ;;  %v1876_v58 = vunpack.c.l.bf16 %v1870_v26  ;;  %v1878_v11 = vunpack.c.l.bf16 %v1871_v4  ;;  %v1877_v63 = vunpack.c.h.bf16 %v1870_v26  ;;  %v1872_v17 = vld [vmem:[#allocation2 + $0xc0] sm:$0x11]  ;;  %v1873_v59 = vld [vmem:[#allocation2 + $0xc8] sm:$0x11]  ;;  %v1874_v21 = vld [vmem:[#allocation2 + $0xd0] sm:$0x11] }
 0x4a8   :  { %2137 = vmatpush1.bf16.msra.mxu1 %v2853_v19  ;;  %2178 = vmatpush1.bf16.msra.mxu0 %v2856_v15  ;;  %v1879_v34 = vunpack.c.h.bf16 %v1871_v4  ;;  %v1880_v51 = vunpack.c.l.bf16 %v1872_v17  ;;  %v1882_v50 = vunpack.c.l.bf16 %v1873_v59  ;;  %v1881_v1 = vunpack.c.h.bf16 %v1872_v17  ;;  %v1875_v0 = vld [vmem:[#allocation2 + $0xd8] sm:$0x1]  ;;  %s2907_s3 = smov [#allocation4]  }
 0x4a9   :  { %2138 = vmatprep.subr.bf16.mxu1 %v2861_v10  ;;  %2179 = vmatprep.subr.bf16.mxu0 %v2864_v42  ;;  %v2314_v32 = vunpack.c.0.s8 %v2313_v29  ;;  %v1892_v13 = vrot.slane %v1876_v58, %v3051_v45  ;;  %v1896_v36 = vrot.slane %v1877_v63, %v3051_v45  ;;  %v1883_v47 = vunpack.c.h.bf16 %v1873_v59  ;;  %s2372_s17 = sshll.u32 %s2907_s3, 4  ;;  %s2373_s17 = int_to_ptr.vmem [resolvable:$true] %s2372_s17 }
 0x4aa   :  { %2168 = vmatprep.mubr.bf16.mxu1 %v2902_v16  ;;  %2209 = vmatprep.mubr.bf16.mxu0 %v2902_v16  ;;  %v1904_v14 = vrot.slane %v1879_v34, %v3051_v45  ;;  %v1908_v7 = vrot.slane %v1880_v51, %v3051_v45  ;;  %v1912_v12 = vrot.slane %v1881_v1, %v3051_v45  ;;  %v1884_v19 = vunpack.c.l.bf16 %v1874_v21  ;;  %s2873_s18 = scalar_lea.vmem %s2373_s17, 352  ;;  %p2878_p1 = scmp.lt.s32.totalorder %s2373_s17, %s2373_s17 }
 0x4ab   :  { %v3629_v37 = vsub.s32 %v2314_v32, %v3038_v38  ;;  %v1916_v38 = vrot.slane %v1882_v50, %v3051_v45  ;;  %v1920_v57 = vrot.slane %v1883_v47, %v3051_v45  ;;  %v1886_v20 = vunpack.c.l.bf16 %v1875_v0  ;;  %p2874_p0 = scmp.ne.s32.totalorder %s2373_s17, %s2873_s18  ;;  %p2879_p2 = scmp.lt.s32.totalorder %s2873_s18, %s2873_s18 }
 0x4ac   :  { %2139 = vmatpush1.bf16.msra.mxu1 %v2859_v22  ;;  %2180 = vmatpush1.bf16.msra.mxu0 %v2862_v6  ;;  %v1885_v6 = vunpack.c.h.bf16 %v1874_v21 }
 0x4ad   :  { %2218 = vmatprep.subr.bf16.mxu1 %v2867_v44  ;;  %2628 = vmatprep.subr.bf16.mxu0 %v2904_v54  ;;  %p2880_p3 = por %p2879_p2, %p2878_p1 }
 0x4ae   :  { %v1928_v4 = vrot.slane %v1885_v6, %v3051_v45 }
 0x4af   :  { %2488 = vmatmul.mubr.msk.bf16.vlgmr.msra.gmra.mrb[20].mxu1 %vm517_vm0, %v1938_v41  ;;  %2489 = vmatmul.mubr.msk.bf16.vlgmr.msra.gmra.mrb[12].mxu0 %vm517_vm0, %v1938_v41  ;;  %p2881_p4 = pnand %p2880_p3, %p2874_p0 }
 0x4b0   :  { %2219 = vmatpush1.bf16.msra.mxu1 %v2865_v2  ;;  %2629 = vmatpush3.bf16.msra.mxu0 %v2868_v8 }
 0x4b1   :  { %2220 = vmatprep.subr.bf16.mxu1 %v2871_v35  ;;  %2630 = vmatprep.subr.bf16.mxu0 %v2904_v54  ;;  %v1924_v35 = vrot.slane %v1884_v19, %v3051_v45 }
 0x4b2   :  { %2250 = vmatprep.mubr.bf16.mxu1 %v2902_v16  ;;  %2632 = vmatprep.mubr.msk.bf16.mxu0 %vm2905_vm10, %v2904_v54  ;;  %v1900_v16 = vrot.slane %v1878_v11, %v3051_v45 }
 0x4b4   :  { %2221 = vmatpush1.bf16.msra.mxu1 %v2869_v27  ;;  %2631 = vmatpush3.bf16.msra.mxu0 %v2872_v9  ;;  %v1932_v27 = vrot.slane %v1886_v20, %v3051_v45 }
 0x4b7   :  { %2490 = vmatmul.mubr.msk.bf16.vlgmr.msra.gmra.mrb[24].mxu1 %vm517_vm0, %v1938_v41  ;;  %2633 = vmatmul.mubr.msk.bf16.vlgmr.msra.gmra.mrb[16].mxu0 %vm517_vm0, %v1938_v41 }
 0x57a   :  { %v2088_v28 = vpop.f32.mrb[16].mxu1  ;;  %v2129_v30 = vpop.f32.mrb[8].mxu0 }
 0x57b   :  { %v2089_v39 = vadd.f32 %v2088_v28, %v1892_v13  ;;  %v2130_v40 = vadd.f32 %v2129_v30, %v1900_v16  ;;  %v2090_v46 = vpop.f32.mrb[17].mxu1  ;;  %v2131_v49 = vpop.f32.mrb[9].mxu0 }
 0x57c   :  { %v2091_v53 = vadd.f32 %v2090_v46, %v1896_v36  ;;  %v2132_v61 = vadd.f32 %v2131_v49, %v1904_v14  ;;  %v2092_v43 = vpop.f32.mrb[18].mxu1  ;;  %v2133_v62 = vpop.f32.mrb[10].mxu0 }
 0x57d   :  { %v2093_v3 = vpop.f32.mrb[19].mxu1  ;;  %v2134_v60 = vpop.f32.mrb[11].mxu0 }
 0x57e   :  { %v2310_v31 = vcombine.low %v2089_v39, %v2091_v53  ;;  %v2311_v52 = vcombine.low %v2130_v40, %v2132_v61 }
 0x580   :  { %v2318_v33 = vrot.slane %v2310_v31, %v3629_v37  ;;  %v2325_v5 = vrot.slane %v2311_v52, %v3629_v37 }
 0x582   :  { %v2326_v23 = vcombine.low %v2318_v33, %v2325_v5  ;;  %v2170_v18 = vpop.f32.mrb[20].mxu1  ;;  %v2211_v24 = vpop.f32.mrb[12].mxu0 }
 0x583   :  { %v2171_v55 = vadd.f32 %v2170_v18, %v1908_v7  ;;  %v2212_v48 = vadd.f32 %v2211_v24, %v1916_v38  ;;  %v2172_v56 = vpop.f32.mrb[21].mxu1  ;;  %v2213_v41 = vpop.f32.mrb[13].mxu0 }
 0x584   :  { %2363 = vst [vmem:[#allocation4] sm:$0xff] %v2326_v23  ;;  %v2173_v15 = vadd.f32 %v2172_v56, %v1912_v12  ;;  %v2214_v10 = vadd.f32 %v2213_v41, %v1920_v57  ;;  %v2174_v42 = vpop.f32.mrb[22].mxu1  ;;  %v2215_v22 = vpop.f32.mrb[14].mxu0 }
 0x585   :  { %v2175_v44 = vpop.f32.mrb[23].mxu1  ;;  %v2216_v2 = vpop.f32.mrb[15].mxu0 }
 0x586   :  { %v2327_v8 = vcombine.low %v2171_v55, %v2173_v15  ;;  %v2328_v54 = vcombine.low %v2212_v48, %v2214_v10 }
 0x588   :  { %v2335_v9 = vrot.slane %v2327_v8, %v3629_v37  ;;  %v2342_v26 = vrot.slane %v2328_v54, %v3629_v37 }
 0x58a   :  { %v2343_v25 = vcombine.low %v2335_v9, %v2342_v26  ;;  %v2252_v29 = vpop.f32.mrb[24].mxu1  ;;  %v2293_v58 = vpop.f32.mrb[16].mxu0 }
 0x58b   :  { %v2253_v11 = vadd.f32 %v2252_v29, %v1924_v35  ;;  %v2254_v63 = vpop.f32.mrb[25].mxu1  ;;  %v2294_v34 = vadd.f32 %v2293_v58, %v1932_v27  ;;  %v2634_v32 = vpop.f32.mrb[17].mxu0 }
 0x58c   :  { %2364 = vst [vmem:[#allocation4 + $0x8] sm:$0xff] %v2343_v25  ;;  %v2255_v13 = vadd.f32 %v2254_v63, %v1928_v4  ;;  %v2256_v16 = vpop.f32.mrb[26].mxu1  ;;  %v2296_v36 = vpop.f32.mrb[18].mxu0 }
 0x58d   :  { %v2257_v14 = vpop.f32.mrb[27].mxu1  ;;  %v2635_v17 = vpop.f32.mrb[19].mxu0  ;;  %v2358_v28 = vrot.slane %v2294_v34, %v3629_v37 }
 0x58e   :  { %v2344_v59 = vcombine.low %v2253_v11, %v2255_v13 }
 0x590   :  { %v2351_v45 = vrot.slane %v2344_v59, %v3629_v37 }
 0x592   :  { %v2359_v30 = vcombine.low %v2351_v45, %v2358_v28 }
 0x594   :  { %2365 = vst [vmem:[#allocation4 + $0x10] sm:$0x3f] %v2359_v30 }
 0x595   :  { %2884 = shalt.err (!%p2881_p4)
}
 0x596   :  { %s2885_s20 = scalar_lea.hbm %s3661_s5, 352 }
 0x597   :  { %p2886_p5 = scmp.ne.s32.totalorder %s3661_s5, %s2885_s20  ;;  %p2889_p6 = scmp.lt.u32.totalorder %s2885_s20, %s3661_s5 }
 0x599   :  { %p2891_p7 = pnand %p2889_p6, %p2886_p5 }
 0x59b   :  { %2894 = shalt.err (!%p2891_p7)
}
 0x59c   :  { %2375 = dma.vmem_to_hbm [thread:$0]  %s2373_s17, 352, %s3661_s5, [#allocation5]  }
 0x59d   :  { %2897 = dma.done.wait [#allocation5], 352  }
 0x59e   :  { %2898 = vsyncadd [#allocation5], 4294966944 }
 0x59f   :  { %2379 = vsyncpa [#allocation5], 1 }
 0x5a0   :  { %2380 = vsyncmov [#allocation3] }
 0x5a3   :  { %s2381_s27 = vpop.sfrf %2380 }
 0x5a4   :  { %p2492_p8 = scmp.ne.s32.totalorder %s2381_s27, 0 }
 0x5a6   :  { %2385 = shalt.err (%p2492_p8)  }

</bundles_post_ra>
